<compile_context>
chip_gen: v7x
topology: tpu7x:2x2x1
jax: 0.10.0
libtpu: 0.0.40
codegen_flags: <defaults>
</compile_context>

<pallas_src>
import jax
import jax.numpy as jnp
import numpy as np
from jax.experimental import pallas as pl
from jax.experimental.pallas import tpu as pltpu

EPS = 1e-5
NEG_SLOPE = 0.2


# --------------------------------- kernel -----------------------------------
def downsample_kernel(x_ref, t1_ref, t2_ref, shift_ref,
                      b1_ref, g1_ref, be1_ref, b2_ref, g2_ref, be2_ref,
                      csum_ref, cbc_ref, hpool_ref, wpool_ref,
                      pool_ref, prime_ref):
    n_rows = x_ref.shape[0]                       # N * H
    wc, cout = csum_ref.shape                     # W*Cout, Cout
    inv_npx = 1.0 / float(n_rows * (wc // cout))  # 1 / (N*H*W)

    def conv3x3(rows, t_ref, bias_row):
        # Single fat-K MXU matmul for all 3 kernel rows (kx taps + 'same' W pad
        # are folded into the fused block-Toeplitz matrix); slices of the result
        # are 128-lane aligned.  ky=1 needs no row shift (identity skipped);
        # ky=0/2 apply the 'same'-H-padded row offset via tiny shift matmuls.
        z = jnp.dot(rows, t_ref[...], preferred_element_type=jnp.float32)
        acc = bias_row + z[:, wc:2 * wc]                          # ky = 1
        acc = acc + jnp.dot(shift_ref[0], z[:, :wc],              # ky = 0
                            preferred_element_type=jnp.float32)
        acc = acc + jnp.dot(shift_ref[1], z[:, 2 * wc:],          # ky = 2
                            preferred_element_type=jnp.float32)
        return acc                                                # (N*H, W*Cout)

    def bn_lrelu(y, g_row, be_row):
        # Training-mode BatchNorm (biased batch variance) + LeakyReLU(0.2).
        # Per-channel fold / broadcast across the W-packed lane axis uses 0/1
        # selection matmuls; the affine is folded so the (N*H, W*Cout) array
        # only sees one mul + one add.
        s = jnp.dot(jnp.sum(y, axis=0, keepdims=True), csum_ref[...],
                    preferred_element_type=jnp.float32)           # (1, Cout)
        ss = jnp.dot(jnp.sum(y * y, axis=0, keepdims=True), csum_ref[...],
                     preferred_element_type=jnp.float32)          # (1, Cout)
        mean = s * inv_npx
        var = jnp.maximum(ss * inv_npx - mean * mean, 0.0)        # clamp >= 0
        inv = jax.lax.rsqrt(var + EPS)
        scale = jnp.dot(inv, cbc_ref[...],
                        preferred_element_type=jnp.float32) * g_row
        offset = be_row - jnp.dot(mean * inv, cbc_ref[...],
                                  preferred_element_type=jnp.float32) * g_row
        yhat = y * scale + offset
        return jnp.where(yhat > 0, yhat, NEG_SLOPE * yhat)        # LeakyReLU(0.2)

    # conv1 -> BN1 -> LeakyReLU1, conv2 -> BN2 -> LeakyReLU2
    h1 = bn_lrelu(conv3x3(x_ref[...], t1_ref, b1_ref[...]),
                  g1_ref[...], be1_ref[...])
    x_prime = bn_lrelu(conv3x3(h1, t2_ref, b2_ref[...]),
                       g2_ref[...], be2_ref[...])

    prime_ref[...] = x_prime.astype(prime_ref.dtype)      # unmasked lane-dense store

    # 2x2 stride-2 average pool as small matmuls; `fold` pooled-row pairs are
    # packed into the lane axis so the pooled store is also full-width.
    fold = hpool_ref.shape[0]
    pooled = jnp.dot(
        jnp.dot(hpool_ref[0], x_prime, preferred_element_type=jnp.float32),
        wpool_ref[0], preferred_element_type=jnp.float32)
    for f in range(1, fold):
        pooled = pooled + jnp.dot(
            jnp.dot(hpool_ref[f], x_prime, preferred_element_type=jnp.float32),
            wpool_ref[f], preferred_element_type=jnp.float32)
    pool_ref[...] = pooled.astype(pool_ref.dtype)


# ---------------------- wrapper-side structured matrices --------------------
def _conv_toeplitz(w, W):
    """w: (3,3,Cin,Cout) HWIO -> fused (W*Cin, 3*W*Cout); kx taps + 'same' W pad
    folded in; column block ky occupies lanes [ky*W*Cout, (ky+1)*W*Cout)."""
    _, kw, cin, cout = w.shape
    sel = np.zeros((kw, W, W), np.float32)        # sel[kx, x_in, x_out]
    for kx in range(kw):
        for x_out in range(W):
            x_in = x_out + kx - 1
            if 0 <= x_in < W:
                sel[kx, x_in, x_out] = 1.0
    # t[x_in, ci, ky, x_out, co] = sum_kx sel[kx, x_in, x_out] * w[ky, kx, ci, co]
    t = jnp.einsum("kpx,ykio->piyxo", jnp.asarray(sel), w.astype(jnp.float32))
    return t.reshape(W * cin, 3 * W * cout)


def _row_shift_mats(N, H):
    """(2, N*H, N*H): out row <- in row = out row + ky - 1 for ky in (0, 2)
    (same image, 'same' H pad).  ky=1 is the identity and is skipped."""
    s = np.zeros((2, N * H, N * H), np.float32)
    for idx, ky in enumerate((0, 2)):
        for n in range(N):
            for h in range(H):
                hi = h + ky - 1
                if 0 <= hi < H:
                    s[idx, n * H + h, n * H + hi] = 1.0
    return jnp.asarray(s)


def _channel_fold_mats(W, Cout):
    csum = np.tile(np.eye(Cout, dtype=np.float32), (W, 1))   # (W*Cout, Cout)
    return jnp.asarray(csum), jnp.asarray(csum.T.copy())     # and (Cout, W*Cout)


def _pool_mats(N, H, W, Cout, fold):
    """Left/right 2x2 avg-pool matrices; `fold` consecutive pooled rows are
    packed into the lane axis of the output to keep the pooled store lane-dense."""
    HP, WP = H // 2, W // 2
    P = HP // fold                              # output rows per image
    R = N * P
    lane_out = fold * WP * Cout
    hp = np.zeros((fold, R, N * H), np.float32)
    wp = np.zeros((fold, W * Cout, lane_out), np.float32)
    for f in range(fold):
        for n in range(N):
            for p in range(P):
                h2 = fold * p + f               # pooled-row index within image
                for d in range(2):
                    hp[f, n * P + p, n * H + 2 * h2 + d] = 0.5
        for w2 in range(WP):
            for d in range(2):
                for c in range(Cout):
                    wp[f, (2 * w2 + d) * Cout + c,
                       f * WP * Cout + w2 * Cout + c] = 0.5
    return jnp.asarray(hp), jnp.asarray(wp), R, lane_out


# --------------------------------- wrapper -----------------------------------
def downsample_forward(x_nchw, params):
    """x_nchw: (N, Cin, H, W) f32 -> (pooled (N,Cout,H/2,W/2), x_prime (N,Cout,H,W))."""
    w1, b1, g1, be1, w2, b2, g2, be2 = params
    N, Cin, H, W = x_nchw.shape
    Cout = w1.shape[-1]

    # NCHW -> channels-last folded rows (N*H, W*Cin): lane-dense kernel operands.
    x_rows = jnp.transpose(x_nchw, (0, 2, 3, 1)).astype(jnp.float32)
    x_rows = x_rows.reshape(N * H, W * Cin)

    t1 = _conv_toeplitz(w1, W)                    # (W*Cin,  3*W*Cout)
    t2 = _conv_toeplitz(w2, W)                    # (W*Cout, 3*W*Cout)
    shift = _row_shift_mats(N, H)                 # (2, N*H, N*H)  for ky = 0, 2
    csum, cbc = _channel_fold_mats(W, Cout)       # (W*Cout, Cout), (Cout, W*Cout)

    # Pack pairs of pooled rows into lanes when the natural pooled lane width
    # ((W/2)*Cout) would otherwise force masked partial stores.
    fold = 2 if ((W // 2) * Cout < 128 and (H // 2) % 2 == 0) else 1
    hpool, wpool, R, lane_out = _pool_mats(N, H, W, Cout, fold)

    def tile_row(v):                              # per-channel vec -> (1, W*Cout)
        return jnp.tile(v.astype(jnp.float32).reshape(-1), W).reshape(1, W * Cout)

    pooled, prime = pl.pallas_call(
        downsample_kernel,
        out_shape=(
            jax.ShapeDtypeStruct((R, lane_out), jnp.float32),
            jax.ShapeDtypeStruct((N * H, W * Cout), jnp.float32),
        ),
        in_specs=[pl.BlockSpec(memory_space=pltpu.MemorySpace.VMEM)] * 14,
        out_specs=(
            pl.BlockSpec(memory_space=pltpu.MemorySpace.VMEM),
            pl.BlockSpec(memory_space=pltpu.MemorySpace.VMEM),
        ),
        compiler_params=pltpu.CompilerParams(vmem_limit_bytes=32 * 1024 * 1024),
    )(x_rows, t1, t2, shift,
      tile_row(b1), tile_row(g1), tile_row(be1),
      tile_row(b2), tile_row(g2), tile_row(be2),
      csum, cbc, hpool, wpool)

    # unfold back to PyTorch's NCHW convention (layout plumbing only; the folded
    # pooled layout is exactly row-major (N, H/2, W/2, Cout))
    x_prime = jnp.transpose(prime.reshape(N, H, W, Cout), (0, 3, 1, 2))
    pooled4 = jnp.transpose(pooled.reshape(N, H // 2, W // 2, Cout), (0, 3, 1, 2))
    return pooled4, x_prime


# ---------------- pure-JAX reference (for correctness check) ----------------
def _ref_forward(x_nchw, params):
    w1, b1, g1, be1, w2, b2, g2, be2 = params
    x = jnp.transpose(x_nchw, (0, 2, 3, 1)).astype(jnp.float32)

    def conv(x, w, b):
        y = jax.lax.conv_general_dilated(
            x, w, window_strides=(1, 1), padding="SAME",
            dimension_numbers=("NHWC", "HWIO", "NHWC"))
        return y + b.reshape(1, 1, 1, -1)

    def bn_lrelu(y, g, be):
        mean = jnp.mean(y, axis=(0, 1, 2), keepdims=True)
        var = jnp.mean((y - mean) ** 2, axis=(0, 1, 2), keepdims=True)
        yhat = (y - mean) * jax.lax.rsqrt(var + EPS)
        yhat = yhat * g.reshape(1, 1, 1, -1) + be.reshape(1, 1, 1, -1)
        return jnp.where(yhat > 0, yhat, NEG_SLOPE * yhat)

    h1 = bn_lrelu(conv(x, w1, b1), g1, be1)
    x_prime = bn_lrelu(conv(h1, w2, b2), g2, be2)
    N, H, W, C = x_prime.shape
    pooled = x_prime.reshape(N, H // 2, 2, W // 2, 2, C).mean(axis=(2, 4))
    return jnp.transpose(pooled, (0, 3, 1, 2)), jnp.transpose(x_prime, (0, 3, 1, 2))


if __name__ == "__main__":
    N, Cin, Cout, H, W = 2, 4, 8, 16, 16

    key = jax.random.PRNGKey(0)
    k1, k2, k3, k4, k5 = jax.random.split(key, 5)

    # Conv weights stored HWIO (3,3,Cin,Cout); BN affine = PyTorch defaults (1, 0).
    w1 = jax.random.normal(k1, (3, 3, Cin, Cout), jnp.float32) * 0.1
    b1 = jax.random.normal(k2, (1, Cout), jnp.float32) * 0.05
    w2 = jax.random.normal(k3, (3, 3, Cout, Cout), jnp.float32) * 0.1
    b2 = jax.random.normal(k4, (1, Cout), jnp.float32) * 0.05
    g1 = jnp.ones((1, Cout), jnp.float32)
    be1 = jnp.zeros((1, Cout), jnp.float32)
    g2 = jnp.ones((1, Cout), jnp.float32)
    be2 = jnp.zeros((1, Cout), jnp.float32)
    params = (w1, b1, g1, be1, w2, b2, g2, be2)

    x = jax.random.normal(k5, (N, Cin, H, W), jnp.float32)

    pooled, x_prime = jax.block_until_ready(downsample_forward(x, params))
    ref_pooled, ref_prime = jax.block_until_ready(_ref_forward(x, params))

    assert pooled.shape == (N, Cout, H // 2, W // 2)
    assert x_prime.shape == (N, Cout, H, W)
    assert jnp.allclose(pooled, ref_pooled, atol=1e-4, rtol=1e-4)
    assert jnp.allclose(x_prime, ref_prime, atol=1e-4, rtol=1e-4)

    print("KERNEL_OK")
</pallas_src>

<mosaic_0001>
module attributes {stable_mosaic.version = 11 : i64} {
  func.func @downsample_kernel(%arg0: memref<32x64xf32, #tpu.memory_space<vmem>>, %arg1: memref<64x384xf32, #tpu.memory_space<vmem>>, %arg2: memref<128x384xf32, #tpu.memory_space<vmem>>, %arg3: memref<2x32x32xf32, #tpu.memory_space<vmem>>, %arg4: memref<1x128xf32, #tpu.memory_space<vmem>>, %arg5: memref<1x128xf32, #tpu.memory_space<vmem>>, %arg6: memref<1x128xf32, #tpu.memory_space<vmem>>, %arg7: memref<1x128xf32, #tpu.memory_space<vmem>>, %arg8: memref<1x128xf32, #tpu.memory_space<vmem>>, %arg9: memref<1x128xf32, #tpu.memory_space<vmem>>, %arg10: memref<128x8xf32, #tpu.memory_space<vmem>>, %arg11: memref<8x128xf32, #tpu.memory_space<vmem>>, %arg12: memref<2x8x32xf32, #tpu.memory_space<vmem>>, %arg13: memref<2x128x128xf32, #tpu.memory_space<vmem>>, %arg14: memref<8x128xf32, #tpu.memory_space<vmem>>, %arg15: memref<32x128xf32, #tpu.memory_space<vmem>>) attributes {dimension_semantics = [], scalar_prefetch = 0 : i64, scratch_operands = 0 : i64, tpu.core_type = #tpu.core_type<tc>} {
    %c0 = arith.constant 0 : index
    %c0_0 = arith.constant 0 : index
    %0 = vector.load %arg0[%c0, %c0_0] : memref<32x64xf32, #tpu.memory_space<vmem>>, vector<32x64xf32>
    %c0_1 = arith.constant 0 : index
    %c0_2 = arith.constant 0 : index
    %1 = vector.load %arg4[%c0_1, %c0_2] : memref<1x128xf32, #tpu.memory_space<vmem>>, vector<1x128xf32>
    %c0_3 = arith.constant 0 : index
    %c0_4 = arith.constant 0 : index
    %2 = vector.load %arg1[%c0_3, %c0_4] : memref<64x384xf32, #tpu.memory_space<vmem>>, vector<64x384xf32>
    %cst = arith.constant dense<0.000000e+00> : vector<32x384xf32>
    %3 = tpu.matmul %0, %2, %cst {dimension_numbers = #tpu.dot_dimension_numbers<[1], [0], [0], [1], [0, 0, 1, 1], [], []>} : vector<32x64xf32>, vector<64x384xf32>, vector<32x384xf32> -> vector<32x384xf32>
    %4 = vector.extract_strided_slice %3 {offsets = [0, 128], sizes = [32, 128], strides = [1, 1]} : vector<32x384xf32> to vector<32x128xf32>
    %5 = vector.broadcast %1 : vector<1x128xf32> to vector<32x128xf32>
    %6 = arith.addf %5, %4 : vector<32x128xf32>
    %c0_5 = arith.constant 0 : index
    %c0_6 = arith.constant 0 : index
    %c0_7 = arith.constant 0 : index
    %7 = vector.load %arg3[%c0_5, %c0_6, %c0_7] : memref<2x32x32xf32, #tpu.memory_space<vmem>>, vector<1x32x32xf32>
    %8 = vector.shape_cast %7 : vector<1x32x32xf32> to vector<32x32xf32>
    %9 = vector.extract_strided_slice %3 {offsets = [0, 0], sizes = [32, 128], strides = [1, 1]} : vector<32x384xf32> to vector<32x128xf32>
    %cst_8 = arith.constant dense<0.000000e+00> : vector<32x128xf32>
    %10 = tpu.matmul %8, %9, %cst_8 {dimension_numbers = #tpu.dot_dimension_numbers<[1], [0], [0], [1], [0, 0, 1, 1], [], []>} : vector<32x32xf32>, vector<32x128xf32>, vector<32x128xf32> -> vector<32x128xf32>
    %11 = arith.addf %6, %10 : vector<32x128xf32>
    %c1 = arith.constant 1 : index
    %c0_9 = arith.constant 0 : index
    %c0_10 = arith.constant 0 : index
    %12 = vector.load %arg3[%c1, %c0_9, %c0_10] : memref<2x32x32xf32, #tpu.memory_space<vmem>>, vector<1x32x32xf32>
    %13 = vector.shape_cast %12 : vector<1x32x32xf32> to vector<32x32xf32>
    %14 = vector.extract_strided_slice %3 {offsets = [0, 256], sizes = [32, 128], strides = [1, 1]} : vector<32x384xf32> to vector<32x128xf32>
    %cst_11 = arith.constant dense<0.000000e+00> : vector<32x128xf32>
    %15 = tpu.matmul %13, %14, %cst_11 {dimension_numbers = #tpu.dot_dimension_numbers<[1], [0], [0], [1], [0, 0, 1, 1], [], []>} : vector<32x32xf32>, vector<32x128xf32>, vector<32x128xf32> -> vector<32x128xf32>
    %16 = arith.addf %11, %15 : vector<32x128xf32>
    %c0_12 = arith.constant 0 : index
    %c0_13 = arith.constant 0 : index
    %17 = vector.load %arg5[%c0_12, %c0_13] : memref<1x128xf32, #tpu.memory_space<vmem>>, vector<1x128xf32>
    %c0_14 = arith.constant 0 : index
    %c0_15 = arith.constant 0 : index
    %18 = vector.load %arg6[%c0_14, %c0_15] : memref<1x128xf32, #tpu.memory_space<vmem>>, vector<1x128xf32>
    %cst_16 = arith.constant dense<0.000000e+00> : vector<128xf32>
    %19 = vector.multi_reduction <add>, %16, %cst_16 [0] : vector<32x128xf32> to vector<128xf32>
    %20 = vector.shape_cast %19 : vector<128xf32> to vector<1x128xf32>
    %c0_17 = arith.constant 0 : index
    %c0_18 = arith.constant 0 : index
    %21 = vector.load %arg10[%c0_17, %c0_18] : memref<128x8xf32, #tpu.memory_space<vmem>>, vector<128x8xf32>
    %cst_19 = arith.constant dense<0.000000e+00> : vector<1x8xf32>
    %22 = tpu.matmul %20, %21, %cst_19 {dimension_numbers = #tpu.dot_dimension_numbers<[1], [0], [0], [1], [0, 0, 1, 1], [], []>} : vector<1x128xf32>, vector<128x8xf32>, vector<1x8xf32> -> vector<1x8xf32>
    %23 = arith.mulf %16, %16 : vector<32x128xf32>
    %cst_20 = arith.constant dense<0.000000e+00> : vector<128xf32>
    %24 = vector.multi_reduction <add>, %23, %cst_20 [0] : vector<32x128xf32> to vector<128xf32>
    %25 = vector.shape_cast %24 : vector<128xf32> to vector<1x128xf32>
    %c0_21 = arith.constant 0 : index
    %c0_22 = arith.constant 0 : index
    %26 = vector.load %arg10[%c0_21, %c0_22] : memref<128x8xf32, #tpu.memory_space<vmem>>, vector<128x8xf32>
    %cst_23 = arith.constant dense<0.000000e+00> : vector<1x8xf32>
    %27 = tpu.matmul %25, %26, %cst_23 {dimension_numbers = #tpu.dot_dimension_numbers<[1], [0], [0], [1], [0, 0, 1, 1], [], []>} : vector<1x128xf32>, vector<128x8xf32>, vector<1x8xf32> -> vector<1x8xf32>
    %cst_24 = arith.constant 0.001953125 : f32
    %28 = vector.broadcast %cst_24 : f32 to vector<1x8xf32>
    %29 = arith.mulf %22, %28 : vector<1x8xf32>
    %cst_25 = arith.constant 0.001953125 : f32
    %30 = vector.broadcast %cst_25 : f32 to vector<1x8xf32>
    %31 = arith.mulf %27, %30 : vector<1x8xf32>
    %32 = arith.mulf %29, %29 : vector<1x8xf32>
    %33 = arith.subf %31, %32 : vector<1x8xf32>
    %cst_26 = arith.constant 0.000000e+00 : f32
    %34 = vector.broadcast %cst_26 : f32 to vector<1x8xf32>
    %35 = arith.maximumf %33, %34 : vector<1x8xf32>
    %cst_27 = arith.constant 9.99999974E-6 : f32
    %36 = vector.broadcast %cst_27 : f32 to vector<1x8xf32>
    %37 = arith.addf %35, %36 : vector<1x8xf32>
    %38 = math.rsqrt %37 : vector<1x8xf32>
    %c0_28 = arith.constant 0 : index
    %c0_29 = arith.constant 0 : index
    %39 = vector.load %arg11[%c0_28, %c0_29] : memref<8x128xf32, #tpu.memory_space<vmem>>, vector<8x128xf32>
    %cst_30 = arith.constant dense<0.000000e+00> : vector<1x128xf32>
    %40 = tpu.matmul %38, %39, %cst_30 {dimension_numbers = #tpu.dot_dimension_numbers<[1], [0], [0], [1], [0, 0, 1, 1], [], []>} : vector<1x8xf32>, vector<8x128xf32>, vector<1x128xf32> -> vector<1x128xf32>
    %41 = arith.mulf %40, %17 : vector<1x128xf32>
    %42 = arith.mulf %29, %38 : vector<1x8xf32>
    %c0_31 = arith.constant 0 : index
    %c0_32 = arith.constant 0 : index
    %43 = vector.load %arg11[%c0_31, %c0_32] : memref<8x128xf32, #tpu.memory_space<vmem>>, vector<8x128xf32>
    %cst_33 = arith.constant dense<0.000000e+00> : vector<1x128xf32>
    %44 = tpu.matmul %42, %43, %cst_33 {dimension_numbers = #tpu.dot_dimension_numbers<[1], [0], [0], [1], [0, 0, 1, 1], [], []>} : vector<1x8xf32>, vector<8x128xf32>, vector<1x128xf32> -> vector<1x128xf32>
    %45 = arith.mulf %44, %17 : vector<1x128xf32>
    %46 = arith.subf %18, %45 : vector<1x128xf32>
    %47 = vector.broadcast %41 : vector<1x128xf32> to vector<32x128xf32>
    %48 = arith.mulf %16, %47 : vector<32x128xf32>
    %49 = vector.broadcast %46 : vector<1x128xf32> to vector<32x128xf32>
    %50 = arith.addf %48, %49 : vector<32x128xf32>
    %cst_34 = arith.constant 0.000000e+00 : f32
    %51 = vector.broadcast %cst_34 : f32 to vector<32x128xf32>
    %52 = arith.cmpf ogt, %50, %51 : vector<32x128xf32>
    %cst_35 = arith.constant 2.000000e-01 : f32
    %53 = vector.broadcast %cst_35 : f32 to vector<32x128xf32>
    %54 = arith.mulf %53, %50 : vector<32x128xf32>
    %55 = arith.select %52, %50, %54 : vector<32x128xi1>, vector<32x128xf32>
    %c0_36 = arith.constant 0 : index
    %c0_37 = arith.constant 0 : index
    %56 = vector.load %arg7[%c0_36, %c0_37] : memref<1x128xf32, #tpu.memory_space<vmem>>, vector<1x128xf32>
    %c0_38 = arith.constant 0 : index
    %c0_39 = arith.constant 0 : index
    %57 = vector.load %arg2[%c0_38, %c0_39] : memref<128x384xf32, #tpu.memory_space<vmem>>, vector<128x384xf32>
    %cst_40 = arith.constant dense<0.000000e+00> : vector<32x384xf32>
    %58 = tpu.matmul %55, %57, %cst_40 {dimension_numbers = #tpu.dot_dimension_numbers<[1], [0], [0], [1], [0, 0, 1, 1], [], []>} : vector<32x128xf32>, vector<128x384xf32>, vector<32x384xf32> -> vector<32x384xf32>
    %59 = vector.extract_strided_slice %58 {offsets = [0, 128], sizes = [32, 128], strides = [1, 1]} : vector<32x384xf32> to vector<32x128xf32>
    %60 = vector.broadcast %56 : vector<1x128xf32> to vector<32x128xf32>
    %61 = arith.addf %60, %59 : vector<32x128xf32>
    %c0_41 = arith.constant 0 : index
    %c0_42 = arith.constant 0 : index
    %c0_43 = arith.constant 0 : index
    %62 = vector.load %arg3[%c0_41, %c0_42, %c0_43] : memref<2x32x32xf32, #tpu.memory_space<vmem>>, vector<1x32x32xf32>
    %63 = vector.shape_cast %62 : vector<1x32x32xf32> to vector<32x32xf32>
    %64 = vector.extract_strided_slice %58 {offsets = [0, 0], sizes = [32, 128], strides = [1, 1]} : vector<32x384xf32> to vector<32x128xf32>
    %cst_44 = arith.constant dense<0.000000e+00> : vector<32x128xf32>
    %65 = tpu.matmul %63, %64, %cst_44 {dimension_numbers = #tpu.dot_dimension_numbers<[1], [0], [0], [1], [0, 0, 1, 1], [], []>} : vector<32x32xf32>, vector<32x128xf32>, vector<32x128xf32> -> vector<32x128xf32>
    %66 = arith.addf %61, %65 : vector<32x128xf32>
    %c1_45 = arith.constant 1 : index
    %c0_46 = arith.constant 0 : index
    %c0_47 = arith.constant 0 : index
    %67 = vector.load %arg3[%c1_45, %c0_46, %c0_47] : memref<2x32x32xf32, #tpu.memory_space<vmem>>, vector<1x32x32xf32>
    %68 = vector.shape_cast %67 : vector<1x32x32xf32> to vector<32x32xf32>
    %69 = vector.extract_strided_slice %58 {offsets = [0, 256], sizes = [32, 128], strides = [1, 1]} : vector<32x384xf32> to vector<32x128xf32>
    %cst_48 = arith.constant dense<0.000000e+00> : vector<32x128xf32>
    %70 = tpu.matmul %68, %69, %cst_48 {dimension_numbers = #tpu.dot_dimension_numbers<[1], [0], [0], [1], [0, 0, 1, 1], [], []>} : vector<32x32xf32>, vector<32x128xf32>, vector<32x128xf32> -> vector<32x128xf32>
    %71 = arith.addf %66, %70 : vector<32x128xf32>
    %c0_49 = arith.constant 0 : index
    %c0_50 = arith.constant 0 : index
    %72 = vector.load %arg8[%c0_49, %c0_50] : memref<1x128xf32, #tpu.memory_space<vmem>>, vector<1x128xf32>
    %c0_51 = arith.constant 0 : index
    %c0_52 = arith.constant 0 : index
    %73 = vector.load %arg9[%c0_51, %c0_52] : memref<1x128xf32, #tpu.memory_space<vmem>>, vector<1x128xf32>
    %cst_53 = arith.constant dense<0.000000e+00> : vector<128xf32>
    %74 = vector.multi_reduction <add>, %71, %cst_53 [0] : vector<32x128xf32> to vector<128xf32>
    %75 = vector.shape_cast %74 : vector<128xf32> to vector<1x128xf32>
    %c0_54 = arith.constant 0 : index
    %c0_55 = arith.constant 0 : index
    %76 = vector.load %arg10[%c0_54, %c0_55] : memref<128x8xf32, #tpu.memory_space<vmem>>, vector<128x8xf32>
    %cst_56 = arith.constant dense<0.000000e+00> : vector<1x8xf32>
    %77 = tpu.matmul %75, %76, %cst_56 {dimension_numbers = #tpu.dot_dimension_numbers<[1], [0], [0], [1], [0, 0, 1, 1], [], []>} : vector<1x128xf32>, vector<128x8xf32>, vector<1x8xf32> -> vector<1x8xf32>
    %78 = arith.mulf %71, %71 : vector<32x128xf32>
    %cst_57 = arith.constant dense<0.000000e+00> : vector<128xf32>
    %79 = vector.multi_reduction <add>, %78, %cst_57 [0] : vector<32x128xf32> to vector<128xf32>
    %80 = vector.shape_cast %79 : vector<128xf32> to vector<1x128xf32>
    %c0_58 = arith.constant 0 : index
    %c0_59 = arith.constant 0 : index
    %81 = vector.load %arg10[%c0_58, %c0_59] : memref<128x8xf32, #tpu.memory_space<vmem>>, vector<128x8xf32>
    %cst_60 = arith.constant dense<0.000000e+00> : vector<1x8xf32>
    %82 = tpu.matmul %80, %81, %cst_60 {dimension_numbers = #tpu.dot_dimension_numbers<[1], [0], [0], [1], [0, 0, 1, 1], [], []>} : vector<1x128xf32>, vector<128x8xf32>, vector<1x8xf32> -> vector<1x8xf32>
    %cst_61 = arith.constant 0.001953125 : f32
    %83 = vector.broadcast %cst_61 : f32 to vector<1x8xf32>
    %84 = arith.mulf %77, %83 : vector<1x8xf32>
    %cst_62 = arith.constant 0.001953125 : f32
    %85 = vector.broadcast %cst_62 : f32 to vector<1x8xf32>
    %86 = arith.mulf %82, %85 : vector<1x8xf32>
    %87 = arith.mulf %84, %84 : vector<1x8xf32>
    %88 = arith.subf %86, %87 : vector<1x8xf32>
    %cst_63 = arith.constant 0.000000e+00 : f32
    %89 = vector.broadcast %cst_63 : f32 to vector<1x8xf32>
    %90 = arith.maximumf %88, %89 : vector<1x8xf32>
    %cst_64 = arith.constant 9.99999974E-6 : f32
    %91 = vector.broadcast %cst_64 : f32 to vector<1x8xf32>
    %92 = arith.addf %90, %91 : vector<1x8xf32>
    %93 = math.rsqrt %92 : vector<1x8xf32>
    %c0_65 = arith.constant 0 : index
    %c0_66 = arith.constant 0 : index
    %94 = vector.load %arg11[%c0_65, %c0_66] : memref<8x128xf32, #tpu.memory_space<vmem>>, vector<8x128xf32>
    %cst_67 = arith.constant dense<0.000000e+00> : vector<1x128xf32>
    %95 = tpu.matmul %93, %94, %cst_67 {dimension_numbers = #tpu.dot_dimension_numbers<[1], [0], [0], [1], [0, 0, 1, 1], [], []>} : vector<1x8xf32>, vector<8x128xf32>, vector<1x128xf32> -> vector<1x128xf32>
    %96 = arith.mulf %95, %72 : vector<1x128xf32>
    %97 = arith.mulf %84, %93 : vector<1x8xf32>
    %c0_68 = arith.constant 0 : index
    %c0_69 = arith.constant 0 : index
    %98 = vector.load %arg11[%c0_68, %c0_69] : memref<8x128xf32, #tpu.memory_space<vmem>>, vector<8x128xf32>
    %cst_70 = arith.constant dense<0.000000e+00> : vector<1x128xf32>
    %99 = tpu.matmul %97, %98, %cst_70 {dimension_numbers = #tpu.dot_dimension_numbers<[1], [0], [0], [1], [0, 0, 1, 1], [], []>} : vector<1x8xf32>, vector<8x128xf32>, vector<1x128xf32> -> vector<1x128xf32>
    %100 = arith.mulf %99, %72 : vector<1x128xf32>
    %101 = arith.subf %73, %100 : vector<1x128xf32>
    %102 = vector.broadcast %96 : vector<1x128xf32> to vector<32x128xf32>
    %103 = arith.mulf %71, %102 : vector<32x128xf32>
    %104 = vector.broadcast %101 : vector<1x128xf32> to vector<32x128xf32>
    %105 = arith.addf %103, %104 : vector<32x128xf32>
    %cst_71 = arith.constant 0.000000e+00 : f32
    %106 = vector.broadcast %cst_71 : f32 to vector<32x128xf32>
    %107 = arith.cmpf ogt, %105, %106 : vector<32x128xf32>
    %cst_72 = arith.constant 2.000000e-01 : f32
    %108 = vector.broadcast %cst_72 : f32 to vector<32x128xf32>
    %109 = arith.mulf %108, %105 : vector<32x128xf32>
    %110 = arith.select %107, %105, %109 : vector<32x128xi1>, vector<32x128xf32>
    %c0_73 = arith.constant 0 : index
    %c0_74 = arith.constant 0 : index
    %111 = vector.load %arg15[%c0_73, %c0_74] : memref<32x128xf32, #tpu.memory_space<vmem>>, vector<32x128xf32>
    tpu.vector_store %arg15[%c0_73, %c0_74], %110 {strides = array<i32>} : memref<32x128xf32, #tpu.memory_space<vmem>>, vector<32x128xf32>,
    %c0_75 = arith.constant 0 : index
    %c0_76 = arith.constant 0 : index
    %c0_77 = arith.constant 0 : index
    %112 = vector.load %arg12[%c0_75, %c0_76, %c0_77] : memref<2x8x32xf32, #tpu.memory_space<vmem>>, vector<1x8x32xf32>
    %113 = vector.shape_cast %112 : vector<1x8x32xf32> to vector<8x32xf32>
    %cst_78 = arith.constant dense<0.000000e+00> : vector<8x128xf32>
    %114 = tpu.matmul %113, %110, %cst_78 {dimension_numbers = #tpu.dot_dimension_numbers<[1], [0], [0], [1], [0, 0, 1, 1], [], []>} : vector<8x32xf32>, vector<32x128xf32>, vector<8x128xf32> -> vector<8x128xf32>
    %c0_79 = arith.constant 0 : index
    %c0_80 = arith.constant 0 : index
    %c0_81 = arith.constant 0 : index
    %115 = vector.load %arg13[%c0_79, %c0_80, %c0_81] : memref<2x128x128xf32, #tpu.memory_space<vmem>>, vector<1x128x128xf32>
    %116 = vector.shape_cast %115 : vector<1x128x128xf32> to vector<128x128xf32>
    %cst_82 = arith.constant dense<0.000000e+00> : vector<8x128xf32>
    %117 = tpu.matmul %114, %116, %cst_82 {dimension_numbers = #tpu.dot_dimension_numbers<[1], [0], [0], [1], [0, 0, 1, 1], [], []>} : vector<8x128xf32>, vector<128x128xf32>, vector<8x128xf32> -> vector<8x128xf32>
    %c1_83 = arith.constant 1 : index
    %c0_84 = arith.constant 0 : index
    %c0_85 = arith.constant 0 : index
    %118 = vector.load %arg12[%c1_83, %c0_84, %c0_85] : memref<2x8x32xf32, #tpu.memory_space<vmem>>, vector<1x8x32xf32>
    %119 = vector.shape_cast %118 : vector<1x8x32xf32> to vector<8x32xf32>
    %cst_86 = arith.constant dense<0.000000e+00> : vector<8x128xf32>
    %120 = tpu.matmul %119, %110, %cst_86 {dimension_numbers = #tpu.dot_dimension_numbers<[1], [0], [0], [1], [0, 0, 1, 1], [], []>} : vector<8x32xf32>, vector<32x128xf32>, vector<8x128xf32> -> vector<8x128xf32>
    %c1_87 = arith.constant 1 : index
    %c0_88 = arith.constant 0 : index
    %c0_89 = arith.constant 0 : index
    %121 = vector.load %arg13[%c1_87, %c0_88, %c0_89] : memref<2x128x128xf32, #tpu.memory_space<vmem>>, vector<1x128x128xf32>
    %122 = vector.shape_cast %121 : vector<1x128x128xf32> to vector<128x128xf32>
    %cst_90 = arith.constant dense<0.000000e+00> : vector<8x128xf32>
    %123 = tpu.matmul %120, %122, %cst_90 {dimension_numbers = #tpu.dot_dimension_numbers<[1], [0], [0], [1], [0, 0, 1, 1], [], []>} : vector<8x128xf32>, vector<128x128xf32>, vector<8x128xf32> -> vector<8x128xf32>
    %124 = arith.addf %117, %123 : vector<8x128xf32>
    %c0_91 = arith.constant 0 : index
    %c0_92 = arith.constant 0 : index
    %125 = vector.load %arg14[%c0_91, %c0_92] : memref<8x128xf32, #tpu.memory_space<vmem>>, vector<8x128xf32>
    tpu.vector_store %arg14[%c0_91, %c0_92], %124 {strides = array<i32>} : memref<8x128xf32, #tpu.memory_space<vmem>>, vector<8x128xf32>,
    return
  }
}

</mosaic_0001>

<bundles_post_ra>
// kernel: tpu_custom_call.1
= control target key start
LH: loop header
LB: loop body
LE: loop exit
PB: predicated region body
PF: predicated region fallthrough
CT: control target
= control target key end

     0   :  { %21 = vsyncpa [#allocation3], 0  ;;  %s3572_s0 = inlined_call_operand.vmem [shape: f32[32,64], index: 0, kind: input, shape index: {}]   ;;  %s3573_s1 = inlined_call_operand.hbm [shape: f32[64,384], index: 1, kind: input, shape index: {}]   ;;  %s3574_s2 = inlined_call_operand.hbm [shape: f32[128,384], index: 2, kind: input, shape index: {}]   ;;  %s3575_s3 = inlined_call_operand.vmem [shape: f32[2,32,32], index: 3, kind: input, shape index: {}]   ;;  %s3576_s4 = inlined_call_operand.vmem [shape: f32[1,128], index: 4, kind: input, shape index: {}]   ;;  %s3577_s5 = inlined_call_operand.vmem [shape: f32[1,128], index: 5, kind: input, shape index: {}]   ;;  %s3578_s6 = inlined_call_operand.vmem [shape: f32[1,128], index: 6, kind: input, shape index: {}]   ;;  %s3579_s7 = inlined_call_operand.vmem [shape: f32[1,128], index: 7, kind: input, shape index: {}]   ;;  %s3580_s8 = inlined_call_operand.vmem [shape: f32[1,128], index: 8, kind: input, shape index: {}]   ;;  %s3581_s9 = inlined_call_operand.vmem [shape: f32[1,128], index: 9, kind: input, shape index: {}]   ;;  %s3582_s10 = inlined_call_operand.vmem [shape: f32[128,8], index: 10, kind: input, shape index: {}]   ;;  %s3583_s11 = inlined_call_operand.vmem [shape: f32[8,128], index: 11, kind: input, shape index: {}]   ;;  %s3584_s12 = inlined_call_operand.vmem [shape: f32[2,8,32], index: 12, kind: input, shape index: {}]   ;;  %s3585_s13 = inlined_call_operand.hbm [shape: f32[2,128,128], index: 13, kind: input, shape index: {}]   ;;  %s3586_s14 = inlined_call_operand.hbm [shape: f32[8,128], index: 14, kind: output, shape index: {0}]   ;;  %s3587_s15 = inlined_call_operand.hbm [shape: f32[32,128], index: 15, kind: output, shape index: {1}]  }
   0x1   :  { %22 = vsyncpa [#allocation6], 0 }
   0x2   :  { %23 = vsyncpa [#allocation4], 0 }
   0x3   :  { %24 = vsyncpa [#allocation10], 0  ;;  %s3029_s18 = smov [#allocation5]   ;;  %s3030_s20 = smov [#allocation2]  }
   0x4   :  { %s44_s19 = sshll.u32 %s3029_s18, 4  ;;  %s32_s21 = sshll.u32 %s3030_s20, 4  ;;  %s45_s19 = int_to_ptr.vmem [resolvable:$true] %s44_s19  ;;  %s3121_s21 = int_to_ptr.vmem [resolvable:$true] %s32_s21 }
   0x5   :  { %s2911_s24 = scalar_lea.hbm %s3574_s2, 6144 }
   0x6   :  { %p2912_p0 = scmp.ne.s32.totalorder %s3574_s2, %s2911_s24  ;;  %p2915_p1 = scmp.lt.u32.totalorder %s2911_s24, %s3574_s2 }
   0x8   :  { %p2917_p2 = pnand %p2915_p1, %p2912_p0 }
   0xa   :  { %2920 = shalt.err (!%p2917_p2)
}
   0xb   :  { %s2921_s29 = scalar_lea.vmem %s45_s19, 6144  ;;  %p2926_p4 = scmp.lt.s32.totalorder %s45_s19, %s45_s19 }
   0xc   :  { %p2922_p3 = scmp.ne.s32.totalorder %s45_s19, %s2921_s29  ;;  %p2927_p5 = scmp.lt.s32.totalorder %s2921_s29, %s2921_s29 }
   0xe   :  { %p2928_p6 = por %p2927_p5, %p2926_p4 }
  0x10   :  { %p2929_p7 = pnand %p2928_p6, %p2922_p3 }
  0x12   :  { %2932 = shalt.err (!%p2929_p7)
}
  0x13   :  { %s3031_s30 = smov 384   ;;  %s3032_s16 = smov 24  }
  0x14   :  { %50 = dma.hbm_to_vmem [thread:$0]  %s3574_s2, 6144, %s45_s19, [#allocation6], %s3031_s30, %s3031_s30, %s3032_s16  }
  0x15   :  { %s2933_s23 = scalar_lea.hbm %s3573_s1, 3072 }
  0x16   :  { %p2934_p8 = scmp.ne.s32.totalorder %s3573_s1, %s2933_s23  ;;  %p2937_p9 = scmp.lt.u32.totalorder %s2933_s23, %s3573_s1 }
  0x18   :  { %p2939_p10 = pnand %p2937_p9, %p2934_p8 }
  0x1a   :  { %2942 = shalt.err (!%p2939_p10)
}
  0x1b   :  { %s2943_s28 = scalar_lea.vmem %s3121_s21, 3072  ;;  %p2948_p12 = scmp.lt.s32.totalorder %s3121_s21, %s3121_s21 }
  0x1c   :  { %p2944_p11 = scmp.ne.s32.totalorder %s3121_s21, %s2943_s28  ;;  %p2949_p13 = scmp.lt.s32.totalorder %s2943_s28, %s2943_s28 }
  0x1e   :  { %p2950_p0 = por %p2949_p13, %p2948_p12 }
  0x20   :  { %p2951_p1 = pnand %p2950_p0, %p2944_p11 }
  0x22   :  { %2954 = shalt.err (!%p2951_p1)
}
  0x23   :  { %38 = dma.hbm_to_vmem [thread:$0]  %s3573_s1, 3072, %s3121_s21, [#allocation3], %s3031_s30, %s3031_s30, %s3032_s16  }
  0x24   :  { %s3033_s29 = smov [#allocation7]   ;;  %s2955_s22 = scalar_lea.hbm %s3585_s13, 4096 }
  0x25   :  { %s76_s17 = sshll.u32 %s3033_s29, 4  ;;  %p2956_p2 = scmp.ne.s32.totalorder %s3585_s13, %s2955_s22  ;;  %s77_s17 = int_to_ptr.vmem [resolvable:$true] %s76_s17 }
  0x26   :  { %p2959_p3 = scmp.lt.u32.totalorder %s2955_s22, %s3585_s13 }
  0x28   :  { %p2961_p4 = pnand %p2959_p3, %p2956_p2 }
  0x2a   :  { %2964 = shalt.err (!%p2961_p4)
}
  0x2b   :  { %s2965_s27 = scalar_lea.vmem %s77_s17, 4096  ;;  %p2970_p6 = scmp.lt.s32.totalorder %s77_s17, %s77_s17 }
  0x2c   :  { %p2966_p5 = scmp.ne.s32.totalorder %s77_s17, %s2965_s27  ;;  %p2971_p7 = scmp.lt.s32.totalorder %s2965_s27, %s2965_s27 }
  0x2e   :  { %p2972_p8 = por %p2971_p7, %p2970_p6 }
  0x30   :  { %p2973_p9 = pnand %p2972_p8, %p2966_p5 }
  0x32   :  { %2976 = shalt.err (!%p2973_p9)
}
  0x33   :  { %s3034_s1 = smov 128   ;;  %s3035_s21 = smov 8  }
  0x34   :  { %82 = dma.hbm_to_vmem [thread:$0]  %s3585_s13, 4096, %s77_s17, [#allocation6], %s3034_s1, %s3034_s1, %s3035_s21  }
  0x35   :  { %3021 = dma.done.wait [#allocation3], 3072  }
  0x36   :  { %3022 = vsyncadd [#allocation3], 4294964224 }
  0x37   :  { %3023 = dma.done.wait [#allocation6], 10240  }
  0x38   :  { %3024 = vsyncadd [#allocation6], 4294957056  ;;  %v3036_v0 = vmov 0.0   ;;  %v98_v1 = vld [vmem:[#allocation2 + $0x8] sm:$0xff]  ;;  %v101_v2 = vld [vmem:[#allocation2 + $0x20] sm:$0xff]  ;;  %vm121_vm0 = vcmask 523264  }
  0x39   :  { %198 = vmatprep.mubr.f32.mxu0 %v3036_v0  ;;  %v99_v3 = vld [vmem:[#allocation2 + $0x10] sm:$0xff]  ;;  %v2609_v4 = vpack.c.bf16 %v101_v2, %v98_v1  ;;  %v102_v5 = vld [vmem:[#allocation2 + $0x28] sm:$0xff]  ;;  %v97_v6 = vld [vmem:[#allocation2] sm:$0xff]  ;;  %vm322_vm1 = vcmask 261120   ;;  %vm3038_vm2 = vmmov 0   ;;  %vm718_vm3 = vcmask 64512  }
  0x3a   :  { %v100_v7 = vld [vmem:[#allocation2 + $0x18] sm:$0xff]  ;;  %v2625_v8 = vpack.c.bf16 %v102_v5, %v99_v3  ;;  %v107_v11 = vld [vmem:[#allocation2 + $0x50] sm:$0xff]  ;;  %v105_v12 = vld [vmem:[#allocation2 + $0x40] sm:$0xff] }
  0x3b   :  { %v2611_v9 = vpack.c.bf16 %v100_v7, %v97_v6  ;;  %v104_v10 = vld [vmem:[#allocation2 + $0x38] sm:$0xff]  ;;  %2610 = vmatprep.subr.bf16.mxu0 %v2609_v4  ;;  %v103_v15 = vld [vmem:[#allocation2 + $0x30] sm:$0xff]  ;;  %v106_v16 = vld [vmem:[#allocation2 + $0x48] sm:$0xff]  ;;  %v3037_v4 = vmov 0.0|0.0  }
  0x3c   :  { %v2613_v13 = vpack.c.bf16 %v107_v11, %v104_v10  ;;  %v108_v14 = vld [vmem:[#allocation2 + $0x58] sm:$0xff]  ;;  %2626 = vmatprep.subr.bf16.mxu1 %v2625_v8  ;;  %v2615_v18 = vpack.c.bf16 %v106_v16, %v103_v15  ;;  %v110_v19 = vld [vmem:[#allocation2 + $0x68] sm:$0xff]  ;;  %v113_v20 = vld [vmem:[#allocation2 + $0x80] sm:$0xff] }
  0x3d   :  { %2612 = vmatpush1.bf16.msra.mxu0 %v2611_v9  ;;  %v2629_v17 = vpack.c.bf16 %v108_v14, %v105_v12  ;;  %v111_v21 = vld [vmem:[#allocation2 + $0x70] sm:$0xff]  ;;  %2628 = vmatpush3.bf16.msra.mxu1 %v2625_v8  ;;  %v2617_v22 = vpack.c.bf16 %v113_v20, %v110_v19  ;;  %v114_v23 = vld [vmem:[#allocation2 + $0x88] sm:$0xff]  ;;  %v109_v24 = vld [vmem:[#allocation2 + $0x60] sm:$0xff] }
  0x3e   :  { %2614 = vmatprep.subr.bf16.mxu0 %v2613_v13  ;;  %v112_v25 = vld [vmem:[#allocation2 + $0x78] sm:$0xff]  ;;  %v2633_v26 = vpack.c.bf16 %v114_v23, %v111_v21  ;;  %v119_v28 = vld [vmem:[#allocation2 + $0xb0] sm:$0xff]  ;;  %v117_v29 = vld [vmem:[#allocation2 + $0xa0] sm:$0xff] }
  0x3f   :  { %2630 = vmatprep.subr.bf16.mxu1 %v2629_v17  ;;  %v116_v27 = vld [vmem:[#allocation2 + $0x98] sm:$0xff]  ;;  %v2619_v31 = vpack.c.bf16 %v112_v25, %v109_v24  ;;  %v115_v33 = vld [vmem:[#allocation2 + $0x90] sm:$0xff]  ;;  %v118_v34 = vld [vmem:[#allocation2 + $0xa8] sm:$0xff] }
  0x40   :  { %v120_v30 = vld [vmem:[#allocation2 + $0xb8] sm:$0xff]  ;;  %v2621_v32 = vpack.c.bf16 %v119_v28, %v116_v27  ;;  %v92_v35 = vld [vmem:[%s3572_s0] sm:$0xff]  ;;  %v2623_v37 = vpack.c.bf16 %v118_v34, %v115_v33  ;;  %v93_v38 = vld [vmem:[%s3572_s0 + $0x8] sm:$0xff] }
  0x41   :  { %2616 = vmatpush1.bf16.msra.mxu0 %v2615_v18  ;;  %2632 = vmatpush3.bf16.msra.mxu1 %v2629_v17  ;;  %v2637_v36 = vpack.c.bf16 %v120_v30, %v117_v29  ;;  %v94_v39 = vld [vmem:[%s3572_s0 + $0x10] sm:$0xff]  ;;  %v95_v40 = vld [vmem:[%s3572_s0 + $0x18] sm:$0xff]  ;;  %v3194_v41 = vld [vmem:[%s3575_s3] sm:$0xff] }
  0x42   :  { %2618 = vmatprep.subr.bf16.mxu0 %v2617_v22  ;;  %2634 = vmatprep.subr.bf16.mxu1 %v2633_v26  ;;  %v3201_v42 = vld [vmem:[%s3575_s3 + $0x20] sm:$0xff]  ;;  %v3214_v56 = vld [vmem:[%s3575_s3 + $0x28] sm:$0xff]  ;;  %v3219_v57 = vld [vmem:[%s3575_s3 + $0x30] sm:$0xff] }
  0x43   :  { %2257 = vmatprep.mubr.msk.f32.mxu1 %vm121_vm0, %v92_v35  ;;  %v541_v61 = vld [vmem:[%s3582_s10] sm:$0xff]  ;;  %v542_v62 = vld [vmem:[%s3582_s10 + $0x8] sm:$0xff]  ;;  %v3236_v63 = vld [vmem:[%s3575_s3 + $0x38] sm:$0xff] }
  0x44   :  { %v3241_v1 = vld [vmem:[%s3575_s3 + $0x8] sm:$0xff]  ;;  %v3243_v2 = vpack.c.bf16 %v542_v62, %v541_v61  ;;  %v3248_v3 = vld [vmem:[%s3575_s3 + $0x10] sm:$0xff]  ;;  %v544_v6 = vld [vmem:[%s3582_s10 + $0x18] sm:$0xff] }
  0x45   :  { %2620 = vmatpush1.bf16.msra.mxu0 %v2619_v31  ;;  %2636 = vmatpush3.bf16.msra.mxu1 %v2633_v26  ;;  %v543_v5 = vld [vmem:[%s3582_s10 + $0x10] sm:$0xff]  ;;  %v3267_v7 = vld [vmem:[%s3575_s3 + $0x18] sm:$0xff]  ;;  %v545_v9 = vld [vmem:[%s3582_s10 + $0x20] sm:$0xff] }
  0x46   :  { %2622 = vmatprep.subr.bf16.mxu0 %v2621_v32  ;;  %2638 = vmatprep.subr.bf16.mxu1 %v2637_v36  ;;  %v3270_v8 = vpack.c.bf16 %v544_v6, %v543_v5  ;;  %v546_v10 = vld [vmem:[%s3582_s10 + $0x28] sm:$0xff]  ;;  %v547_v12 = vld [vmem:[%s3582_s10 + $0x30] sm:$0xff]  ;;  %v548_v13 = vld [vmem:[%s3582_s10 + $0x38] sm:$0xff] }
  0x47   :  { %v3283_v11 = vpack.c.bf16 %v546_v10, %v545_v9  ;;  %v3293_v14 = vpack.c.bf16 %v548_v13, %v547_v12  ;;  %v549_v15 = vld [vmem:[%s3582_s10 + $0x40] sm:$0xff]  ;;  %v550_v16 = vld [vmem:[%s3582_s10 + $0x48] sm:$0xff]  ;;  %v551_v18 = vld [vmem:[%s3582_s10 + $0x50] sm:$0xff] }
  0x48   :  { %v3303_v17 = vpack.c.bf16 %v550_v16, %v549_v15  ;;  %v552_v19 = vld [vmem:[%s3582_s10 + $0x58] sm:$0xff]  ;;  %v553_v21 = vld [vmem:[%s3582_s10 + $0x60] sm:$0xff]  ;;  %v554_v22 = vld [vmem:[%s3582_s10 + $0x68] sm:$0xff] }
  0x49   :  { %2624 = vmatpush1.bf16.msra.mxu0 %v2623_v37  ;;  %2640 = vmatpush3.bf16.msra.mxu1 %v2637_v36  ;;  %v3313_v20 = vpack.c.bf16 %v552_v19, %v551_v18  ;;  %v3323_v23 = vpack.c.bf16 %v554_v22, %v553_v21  ;;  %v555_v24 = vld [vmem:[%s3582_s10 + $0x70] sm:$0xff]  ;;  %v556_v25 = vld [vmem:[%s3582_s10 + $0x78] sm:$0xff]  ;;  %v2028_v29 = vld [vmem:[%s3576_s4] ss:$0 sm:$0xff] }
  0x4a   :  { %v3333_v26 = vpack.c.bf16 %v556_v25, %v555_v24  ;;  %v3389_v22 = vld [vmem:[%s3583_s11] sm:$0xff]  ;;  %v901_v24 = vld [vmem:[#allocation5 + $0x8] sm:$0xff] }
  0x4b   :  { %v904_v25 = vld [vmem:[#allocation5 + $0x20] sm:$0xff] }
  0x4c   :  { %2020 = vmatmul.mubr.msk.f32.vlgmr.msra.gmra.mrb[0].mxu0 %vm121_vm0, %v92_v35  ;;  %2258 = vmatmul.mubr.msk.f32.vlgmr.msra.gmra.mrb[0].mxu1 %vm121_vm0, %v93_v38 }
  0x4d   :  { %204 = vmatprep.mubr.f32.mxu0 %v3036_v0  ;;  %2260 = vmatprep.mubr.msk.f32.mxu1 %vm121_vm0, %v94_v39 }
  0x50   :  { %2021 = vmatmul.mubr.msk.f32.gmra.mrb[2].mxu0 %vm121_vm0, %v93_v38  ;;  %2261 = vmatmul.mubr.msk.f32.gmra.mrb[2].mxu1 %vm121_vm0, %v95_v40 }
  0x51   :  { %210 = vmatprep.mubr.f32.mxu0 %v3036_v0  ;;  %2271 = vmatprep.mubr.msk.f32.mxu1 %vm322_vm1, %v3194_v41 }
  0x54   :  { %2022 = vmatmul.mubr.msk.f32.gmra.mrb[4].mxu0 %vm121_vm0, %v94_v39 }
  0x55   :  { %216 = vmatprep.mubr.f32.mxu0 %v3036_v0 }
  0x58   :  { %2023 = vmatmul.mubr.msk.f32.gmra.mrb[6].mxu0 %vm121_vm0, %v95_v40 }
  0x59   :  { %2285 = vmatprep.mubr.msk.f32.mxu0 %vm322_vm1, %v3201_v42 }
 0x11f   :  { %v200_v43 = vpop.f32.mrb[0].mxu0  ;;  %v2259_v44 = vpop.f32.mrb[0].mxu1 }
 0x120   :  { %v3205_v45 = vpop.f32.mrb[1].mxu0  ;;  %v289_v46 = vpop.f32.mrb[1].mxu1 }
 0x121   :  { %v2649_v47 = vpack.c.bf16 %v2259_v44, %v289_v46  ;;  %v314_v33 = vadd.f32 %v2028_v29, %v3205_v45 }
 0x123   :  { %v206_v48 = vpop.f32.mrb[2].mxu0  ;;  %2650 = vmatprep.subr.bf16.mxu0 %v2649_v47  ;;  %v2262_v51 = vpop.f32.mrb[2].mxu1 }
 0x124   :  { %v2641_v49 = vpack.c.bf16 %v206_v48, %v200_v43  ;;  %v3207_v50 = vpop.f32.mrb[3].mxu0  ;;  %2652 = vmatpush3.bf16.msra.mxu0 %v2649_v47  ;;  %v299_v52 = vpop.f32.mrb[3].mxu1 }
 0x125   :  { %v2653_v53 = vpack.c.bf16 %v2262_v51, %v299_v52  ;;  %v315_v31 = vadd.f32 %v2028_v29, %v3207_v50 }
 0x126   :  { %2642 = vmatprep.subr.bf16.mxu1 %v2641_v49 }
 0x127   :  { %v212_v54 = vpop.f32.mrb[4].mxu0  ;;  %2644 = vmatpush3.bf16.msra.mxu1 %v2641_v49  ;;  %2654 = vmatprep.subr.bf16.mxu0 %v2653_v53 }
 0x128   :  { %v3209_v55 = vpop.f32.mrb[5].mxu0  ;;  %2656 = vmatpush3.bf16.msra.mxu0 %v2653_v53 }
 0x129   :  { %v316_v40 = vadd.f32 %v2028_v29, %v3209_v55 }
 0x12b   :  { %v218_v58 = vpop.f32.mrb[6].mxu0  ;;  %2286 = vmatmul.mubr.msk.f32.vlgmr.msra.gmra.mrb[8].mxu0 %vm322_vm1, %v3214_v56 }
 0x12c   :  { %v2645_v59 = vpack.c.bf16 %v218_v58, %v212_v54  ;;  %v3221_v60 = vpop.f32.mrb[7].mxu0  ;;  %2288 = vmatprep.mubr.msk.f32.mxu0 %vm322_vm1, %v3219_v57 }
 0x12d   :  { %v317_v38 = vadd.f32 %v2028_v29, %v3221_v60  ;;  %v903_v29 = vld [vmem:[#allocation5 + $0x18] sm:$0xff] }
 0x12e   :  { %2646 = vmatprep.subr.bf16.mxu1 %v2645_v59 }
 0x12f   :  { %2648 = vmatpush3.bf16.msra.mxu1 %v2645_v59  ;;  %2289 = vmatmul.mubr.msk.f32.gmra.mrb[10].mxu0 %vm322_vm1, %v3236_v63 }
 0x130   :  { %2657 = vmatprep.subr.bf16.mxu1 %v3037_v4  ;;  %1012 = vmatprep.mubr.f32.mxu0 %v3036_v0 }
 0x132   :  { %2272 = vmatmul.mubr.msk.f32.vlgmr.msra.gmra.mrb[4].mxu1 %vm322_vm1, %v3241_v1 }
 0x133   :  { %2274 = vmatprep.mubr.msk.f32.mxu1 %vm322_vm1, %v3248_v3  ;;  %2659 = vmatpush3.bf16.msra.mxu1 %v3243_v2 }
 0x134   :  { %2660 = vmatprep.subr.bf16.mxu1 %v3037_v4 }
 0x136   :  { %2275 = vmatmul.mubr.msk.f32.gmra.mrb[6].mxu1 %vm322_vm1, %v3267_v7 }
 0x137   :  { %2662 = vmatpush3.bf16.msra.mxu1 %v3270_v8  ;;  %2323 = vmatprep.mubr.msk.f32.mxu1 %vm3038_vm2, %v3036_v0 }
 0x138   :  { %2663 = vmatprep.subr.bf16.mxu1 %v3037_v4 }
 0x13b   :  { %2665 = vmatpush3.bf16.msra.mxu1 %v3283_v11 }
 0x13c   :  { %2666 = vmatprep.subr.bf16.mxu1 %v3037_v4 }
 0x13f   :  { %2668 = vmatpush3.bf16.msra.mxu1 %v3293_v14 }
 0x140   :  { %2669 = vmatprep.subr.bf16.mxu1 %v3037_v4 }
 0x143   :  { %2671 = vmatpush3.bf16.msra.mxu1 %v3303_v17 }
 0x144   :  { %2672 = vmatprep.subr.bf16.mxu1 %v3037_v4 }
 0x147   :  { %2674 = vmatpush3.bf16.msra.mxu1 %v3313_v20 }
 0x148   :  { %2675 = vmatprep.subr.bf16.mxu1 %v3037_v4 }
 0x14b   :  { %2677 = vmatpush3.bf16.msra.mxu1 %v3323_v23 }
 0x14c   :  { %2678 = vmatprep.subr.bf16.mxu1 %v3037_v4 }
 0x14f   :  { %2680 = vmatpush3.bf16.msra.mxu1 %v3333_v26 }
 0x150   :  { %2681 = vmatprep.subr.bf16.mxu1 %v3037_v4 }
 0x1fe   :  { %v2287_v27 = vpop.f32.mrb[8].mxu0 }
 0x1ff   :  { %v507_v28 = vpop.f32.mrb[9].mxu0 }
 0x202   :  { %v2290_v30 = vpop.f32.mrb[10].mxu0 }
 0x203   :  { %v517_v32 = vpop.f32.mrb[11].mxu0 }
 0x205   :  { %v2273_v34 = vpop.f32.mrb[4].mxu1 }
 0x206   :  { %v421_v35 = vadd.f32 %v2273_v34, %v315_v31  ;;  %v401_v36 = vpop.f32.mrb[5].mxu1  ;;  %v907_v31 = vld [vmem:[#allocation5 + $0x38] sm:$0xff] }
 0x207   :  { %v420_v37 = vadd.f32 %v401_v36, %v314_v33  ;;  %v906_v33 = vld [vmem:[#allocation5 + $0x30] sm:$0xff] }
 0x208   :  { %v3345_v39 = vadd.f32 %v2287_v27, %v421_v35  ;;  %v900_v27 = vld [vmem:[#allocation5] sm:$0xff]  ;;  %v909_v35 = vld [vmem:[#allocation5 + $0x48] sm:$0xff] }
 0x209   :  { %v3348_v43 = vadd.f32 %v507_v28, %v420_v37  ;;  %v2276_v44 = vpop.f32.mrb[6].mxu1  ;;  %v2705_v28 = vpack.c.bf16 %v904_v25, %v901_v24  ;;  %v2711_v36 = vpack.c.bf16 %v909_v35, %v906_v33  ;;  %v913_v37 = vld [vmem:[#allocation5 + $0x68] sm:$0xff]  ;;  %v914_v25 = vld [vmem:[#allocation5 + $0x70] sm:$0xff]  ;;  %v928_v33 = vld [vmem:[#allocation5 + $0xe0] sm:$0xff] }
 0x20a   :  { %v423_v46 = vadd.f32 %v2276_v44, %v317_v38  ;;  %v411_v47 = vpop.f32.mrb[7].mxu1  ;;  %v628_v59 = vmul.f32 %v3345_v39, %v3345_v39  ;;  %v916_v38 = vld [vmem:[#allocation5 + $0x80] sm:$0xff] }
 0x20b   :  { %v422_v48 = vadd.f32 %v411_v47, %v316_v40  ;;  %v532_v45 = vadd.f32 %v3345_v39, %v3348_v43  ;;  %v627_v60 = vmul.f32 %v3348_v43, %v3348_v43  ;;  %2706 = vmatprep.subr.bf16.mxu0 %v2705_v28  ;;  %v912_v40 = vld [vmem:[#allocation5 + $0x60] sm:$0xff]  ;;  %v2713_v44 = vpack.c.bf16 %v916_v38, %v913_v37  ;;  %v926_v37 = vld [vmem:[#allocation5 + $0xd0] sm:$0xff] }
 0x20c   :  { %v3350_v49 = vadd.f32 %v2290_v30, %v423_v46  ;;  %v2707_v30 = vpack.c.bf16 %v903_v29, %v900_v27  ;;  %v915_v46 = vld [vmem:[#allocation5 + $0x78] sm:$0xff]  ;;  %v917_v27 = vld [vmem:[#allocation5 + $0x88] sm:$0xff]  ;;  %v920_v29 = vld [vmem:[#allocation5 + $0xa0] sm:$0xff] }
 0x20d   :  { %v3354_v50 = vadd.f32 %v517_v32, %v422_v48  ;;  %v631_v6 = vadd.f32 %v628_v59, %v627_v60  ;;  %v910_v32 = vld [vmem:[#allocation5 + $0x50] sm:$0xff]  ;;  %v2715_v47 = vpack.c.bf16 %v915_v46, %v912_v40  ;;  %v919_v48 = vld [vmem:[#allocation5 + $0x98] sm:$0xff]  ;;  %v2745_v28 = vpack.c.bf16 %v917_v27, %v914_v25  ;;  %v924_v35 = vld [vmem:[#allocation5 + $0xc0] sm:$0xff] }
 0x20e   :  { %v630_v10 = vmul.f32 %v3350_v49, %v3350_v49  ;;  %v2709_v34 = vpack.c.bf16 %v910_v32, %v907_v31  ;;  %2708 = vmatpush1.bf16.msra.mxu0 %v2707_v30  ;;  %v923_v30 = vld [vmem:[#allocation5 + $0xb8] sm:$0xff]  ;;  %v925_v32 = vld [vmem:[#allocation5 + $0xc8] sm:$0xff]  ;;  %v869_v27 = vlaneseq }
 0x20f   :  { %v533_v51 = vadd.f32 %v532_v45, %v3354_v50  ;;  %v629_v62 = vmul.f32 %v3354_v50, %v3354_v50  ;;  %v922_v45 = vld [vmem:[#allocation5 + $0xb0] sm:$0xff]  ;;  %v2749_v31 = vpack.c.bf16 %v923_v30, %v920_v29  ;;  %v929_v40 = vld [vmem:[#allocation5 + $0xe8] sm:$0xff]  ;;  %v931_v46 = vld [vmem:[#allocation5 + $0xf8] sm:$0xff] }
 0x210   :  { %2710 = vmatprep.subr.bf16.mxu0 %v2709_v34  ;;  %v2721_v34 = vpack.c.bf16 %v928_v33, %v925_v32  ;;  %v530_v29 = vld [vmem:[%s3577_s5] sm:$0x1] }
 0x211   :  { %v534_v52 = vadd.f32 %v533_v51, %v3350_v49  ;;  %v632_v9 = vadd.f32 %v631_v6, %v629_v62  ;;  %v918_v51 = vld [vmem:[#allocation5 + $0x90] sm:$0xff] }
 0x212   :  { %2712 = vmatpush1.bf16.msra.mxu0 %v2711_v36  ;;  %v927_v36 = vld [vmem:[#allocation5 + $0xd8] sm:$0xff] }
 0x213   :  { %v535_v53 = vrot.slane %v534_v52, 4  ;;  %v633_v12 = vadd.f32 %v632_v9, %v630_v10  ;;  %2714 = vmatprep.subr.bf16.mxu0 %v2713_v44  ;;  %v2723_v38 = vpack.c.bf16 %v927_v36, %v924_v35  ;;  %v2753_v44 = vpack.c.bf16 %v929_v40, %v926_v37  ;;  %v531_v35 = vld [vmem:[%s3578_s6] sm:$0x1] }
 0x215   :  { %v536_v54 = vadd.f32 %v535_v53, %v534_v52  ;;  %v634_v13 = vrot.slane %v633_v12, 4  ;;  %v2717_v52 = vpack.c.bf16 %v922_v45, %v919_v48  ;;  %v921_v53 = vld [vmem:[#allocation5 + $0xa8] sm:$0xff]  ;;  %v930_v45 = vld [vmem:[#allocation5 + $0xf0] sm:$0xff] }
 0x216   :  { %2716 = vmatpush1.bf16.msra.mxu0 %v2715_v47  ;;  %v934_v47 = vld [vmem:[#allocation5 + $0x110] sm:$0xff] }
 0x217   :  { %v537_v55 = vrot.slane %v536_v54, 2  ;;  %v635_v15 = vadd.f32 %v634_v13, %v633_v12  ;;  %2718 = vmatprep.subr.bf16.mxu0 %v2717_v52  ;;  %v902_v12 = vld [vmem:[#allocation5 + $0x10] sm:$0xff]  ;;  %v905_v13 = vld [vmem:[#allocation5 + $0x28] sm:$0xff]  ;;  %v2725_v48 = vpack.c.bf16 %v934_v47, %v931_v46  ;;  %v932_v52 = vld [vmem:[#allocation5 + $0x100] sm:$0xff] }
 0x219   :  { %v538_v58 = vadd.f32 %v537_v55, %v536_v54  ;;  %v636_v16 = vrot.slane %v635_v15, 2  ;;  %v2719_v54 = vpack.c.bf16 %v921_v53, %v918_v51  ;;  %v933_v51 = vld [vmem:[#allocation5 + $0x108] sm:$0xff] }
 0x21a   :  { %v2727_v53 = vpack.c.bf16 %v933_v51, %v930_v45 }
 0x21b   :  { %v539_v61 = vrot.slane %v538_v58, 1  ;;  %v637_v18 = vadd.f32 %v636_v16, %v635_v15  ;;  %2720 = vmatpush1.bf16.msra.mxu0 %v2719_v54  ;;  %v2737_v15 = vpack.c.bf16 %v905_v13, %v902_v12  ;;  %v935_v54 = vld [vmem:[#allocation5 + $0x118] sm:$0xff]  ;;  %v946_v13 = vld [vmem:[#allocation5 + $0x170] sm:$0xff] }
 0x21c   :  { %2722 = vmatprep.subr.bf16.mxu0 %v2721_v34  ;;  %v943_v12 = vld [vmem:[#allocation5 + $0x158] sm:$0xff] }
 0x21d   :  { %v540_v5 = vadd.f32 %v539_v61, %v538_v58  ;;  %v638_v19 = vrot.slane %v637_v18, 1 }
 0x21f   :  { %2324 = vmatmul.mubr.f32.vlgmr.msra.gmra.mrb[8].mxu1 %v540_v5  ;;  %v639_v21 = vadd.f32 %v638_v19, %v637_v18  ;;  %v908_v18 = vld [vmem:[#allocation5 + $0x40] sm:$0xff]  ;;  %v911_v19 = vld [vmem:[#allocation5 + $0x58] sm:$0xff]  ;;  %2724 = vmatpush1.bf16.msra.mxu0 %v2723_v38 }
 0x220   :  { %2683 = vmatpush3.bf16.msra.mxu1 %v3243_v2  ;;  %2358 = vmatprep.mubr.msk.f32.mxu1 %vm3038_vm2, %v3036_v0  ;;  %v2741_v24 = vpack.c.bf16 %v911_v19, %v908_v18  ;;  %v945_v18 = vld [vmem:[#allocation5 + $0x168] sm:$0xff]  ;;  %v944_v19 = vld [vmem:[#allocation5 + $0x160] sm:$0xff] }
 0x221   :  { %2684 = vmatprep.subr.bf16.mxu1 %v3037_v4  ;;  %2726 = vmatprep.subr.bf16.mxu0 %v2725_v48 }
 0x223   :  { %2728 = vmatpush1.bf16.msra.mxu0 %v2727_v53 }
 0x224   :  { %2686 = vmatpush3.bf16.msra.mxu1 %v3270_v8 }
 0x225   :  { %2687 = vmatprep.subr.bf16.mxu1 %v3037_v4 }
 0x228   :  { %2689 = vmatpush3.bf16.msra.mxu1 %v3283_v11 }
 0x229   :  { %2690 = vmatprep.subr.bf16.mxu1 %v3037_v4 }
 0x22c   :  { %2692 = vmatpush3.bf16.msra.mxu1 %v3293_v14 }
 0x22d   :  { %2693 = vmatprep.subr.bf16.mxu1 %v3037_v4 }
 0x230   :  { %2695 = vmatpush3.bf16.msra.mxu1 %v3303_v17 }
 0x231   :  { %2696 = vmatprep.subr.bf16.mxu1 %v3037_v4 }
 0x234   :  { %2698 = vmatpush3.bf16.msra.mxu1 %v3313_v20 }
 0x235   :  { %2699 = vmatprep.subr.bf16.mxu1 %v3037_v4 }
 0x238   :  { %2701 = vmatpush3.bf16.msra.mxu1 %v3323_v23 }
 0x239   :  { %2702 = vmatprep.subr.bf16.mxu1 %v3037_v4 }
 0x23c   :  { %2704 = vmatpush3.bf16.msra.mxu1 %v3333_v26 }
 0x23d   :  { %2361 = vmatprep.subr.mxu1 %v3036_v0 }
 0x23f   :  { %2359 = vmatmul.mubr.f32.vlgmr.msra.gmra.mrb[10].mxu1 %v639_v21 }
 0x240   :  { %2363 = vmatprep.mubr.msk.f32.mxu1 %vm3038_vm2, %v3036_v0  ;;  %2362 = vmatpush3.msra.mxu1 %v3389_v22 }
 0x241   :  { %2366 = vmatprep.subr.mxu1 %v3036_v0 }
 0x2f2   :  { %v623_v55 = vpop.f32.mrb[8].mxu1 }
 0x2f3   :  { %v2325_v58 = vpop.f32.mrb[9].mxu1  ;;  %v710_v59 = vmul.f32 0.001953125, %v623_v55  ;;  %v2757_v55 = vpack.c.bf16 %v935_v54, %v932_v52 }
 0x2f4   :  { %v937_v58 = vld [vmem:[#allocation5 + $0x128] sm:$0xff] }
 0x2f5   :  { %v712_v61 = vmul.f32 %v710_v59, %v710_v59 }
 0x312   :  { %v706_v60 = vpop.f32.mrb[10].mxu1 }
 0x313   :  { %v711_v62 = vmul.f32 0.001953125, %v706_v60  ;;  %v2360_v5 = vpop.f32.mrb[11].mxu1 }
 0x314   :  { %v938_v5 = vld [vmem:[#allocation5 + $0x130] sm:$0xff] }
 0x315   :  { %v713_v6 = vsub.f32 %v711_v62, %v712_v61  ;;  %v936_v61 = vld [vmem:[#allocation5 + $0x120] sm:$0xff]  ;;  %v939_v62 = vld [vmem:[#allocation5 + $0x138] sm:$0xff] }
 0x317   :  { %v714_v9 = vmax.f32 %v713_v6, 0.0  ;;  %v2731_v6 = vpack.c.bf16 %v939_v62, %v936_v61 }
 0x319   :  { %v715_v10 = vadd.f32 1e-05, %v714_v9  ;;  %v941_v9 = vld [vmem:[#allocation5 + $0x148] sm:$0xff] }
 0x31b   :  { %2907 = vrsqrt.f32 %v715_v10  ;;  %v2761_v10 = vpack.c.bf16 %v941_v9, %v938_v5 }
 0x325   :  { %v2908_v16 = vpop.eup %2907 }
 0x326   :  { %2364 = vmatmul.mubr.msk.f32.vlgmr.msra.gmra.mrb[12].mxu1 %vm718_vm3, %v2908_v16  ;;  %v793_v21 = vmul.f32 %v2908_v16, %v710_v59  ;;  %v940_v59 = vld [vmem:[#allocation5 + $0x140] sm:$0xff]  ;;  %v2733_v16 = vpack.c.bf16 %v946_v13, %v943_v12 }
 0x327   :  { %2367 = vmatpush3.msra.mxu1 %v3389_v22  ;;  %2368 = vmatprep.mubr.msk.f32.mxu1 %vm3038_vm2, %v3036_v0  ;;  %v2729_v60 = vpack.c.bf16 %v940_v59, %v937_v58 }
 0x328   :  { %2738 = vmatprep.subr.bf16.mxu1 %v2737_v15 }
 0x329   :  { %2730 = vmatprep.subr.bf16.mxu0 %v2729_v60 }
 0x32a   :  { %2369 = vmatmul.mubr.msk.f32.vlgmr.msra.gmra.mrb[14].mxu1 %vm718_vm3, %v793_v21  ;;  %2732 = vmatpush1.bf16.msra.mxu0 %v2731_v6  ;;  %v947_v21 = vld [vmem:[#allocation5 + $0x178] sm:$0xff] }
 0x32b   :  { %2740 = vmatpush3.bf16.msra.mxu1 %v2737_v15  ;;  %v942_v15 = vld [vmem:[#allocation5 + $0x150] sm:$0xff]  ;;  %v2765_v25 = vpack.c.bf16 %v947_v21, %v944_v19  ;;  %2734 = vmatprep.subr.bf16.mxu0 %v2733_v16 }
 0x32c   :  { %2742 = vmatprep.subr.bf16.mxu1 %v2741_v24 }
 0x32f   :  { %2744 = vmatpush3.bf16.msra.mxu1 %v2741_v24  ;;  %v2735_v24 = vpack.c.bf16 %v945_v18, %v942_v15 }
 0x330   :  { %2746 = vmatprep.subr.bf16.mxu1 %v2745_v28 }
 0x331   :  { %2736 = vmatpush1.bf16.msra.mxu0 %v2735_v24 }
 0x333   :  { %2748 = vmatpush3.bf16.msra.mxu1 %v2745_v28  ;;  %v870_v28 = vshrl.u32 %v869_v27, 7 }
 0x334   :  { %2750 = vmatprep.subr.bf16.mxu1 %v2749_v31 }
 0x337   :  { %2752 = vmatpush3.bf16.msra.mxu1 %v2749_v31  ;;  %v3401_v31 = vsub.s32 0, %v870_v28 }
 0x338   :  { %2754 = vmatprep.subr.bf16.mxu1 %v2753_v44 }
 0x33b   :  { %2756 = vmatpush3.bf16.msra.mxu1 %v2753_v44 }
 0x33c   :  { %2758 = vmatprep.subr.bf16.mxu1 %v2757_v55 }
 0x33f   :  { %2760 = vmatpush3.bf16.msra.mxu1 %v2757_v55 }
 0x340   :  { %2762 = vmatprep.subr.bf16.mxu1 %v2761_v10 }
 0x343   :  { %2764 = vmatpush3.bf16.msra.mxu1 %v2761_v10 }
 0x344   :  { %2766 = vmatprep.subr.bf16.mxu1 %v2765_v25 }
 0x347   :  { %2768 = vmatpush3.bf16.msra.mxu1 %v2765_v25 }
 0x3f9   :  { %v788_v30 = vpop.f32.mrb[12].mxu1 }
 0x3fa   :  { %v792_v32 = vmul.f32 %v788_v30, %v530_v29  ;;  %v2365_v33 = vpop.f32.mrb[13].mxu1 }
 0x3fc   :  { %v872_v34 = vrot.slane %v792_v32, %v3401_v31 }
 0x3fd   :  { %v863_v36 = vpop.f32.mrb[14].mxu1 }
 0x3fe   :  { %v867_v37 = vmul.f32 %v863_v36, %v530_v29  ;;  %v2370_v38 = vpop.f32.mrb[15].mxu1  ;;  %v873_v44 = vmul.f32 %v872_v34, %v3348_v43  ;;  %v874_v47 = vmul.f32 %v872_v34, %v3345_v39  ;;  %v875_v48 = vmul.f32 %v872_v34, %v3354_v50 }
 0x3ff   :  { %v876_v45 = vmul.f32 %v872_v34, %v3350_v49 }
 0x400   :  { %v868_v40 = vsub.f32 %v531_v35, %v867_v37 }
 0x402   :  { %v881_v46 = vrot.slane %v868_v40, %v3401_v31 }
 0x404   :  { %v883_v51 = vadd.f32 %v881_v46, %v873_v44  ;;  %v884_v52 = vadd.f32 %v881_v46, %v874_v47  ;;  %v885_v53 = vadd.f32 %v881_v46, %v875_v48  ;;  %v886_v54 = vadd.f32 %v881_v46, %v876_v45 }
 0x406   :  { %vm887_vm4 = vcmp.gt.f32.partialorder %v883_v51, 0.0  ;;  %v891_v55 = vmul.f32 0.2, %v883_v51  ;;  %vm888_vm5 = vcmp.gt.f32.partialorder %v884_v52, 0.0  ;;  %v892_v58 = vmul.f32 0.2, %v884_v52 }
 0x407   :  { %vm889_vm6 = vcmp.gt.f32.partialorder %v885_v53, 0.0  ;;  %v893_v59 = vmul.f32 0.2, %v885_v53  ;;  %v894_v61 = vmul.f32 0.2, %v886_v54  ;;  %vm890_vm7 = vcmp.gt.f32.partialorder %v886_v54, 0.0 }
 0x408   :  { %v895_v60 = vsel %vm887_vm4, %v883_v51, %v891_v55  ;;  %v896_v43 = vsel %vm888_vm5, %v884_v52, %v892_v58 }
 0x409   :  { %1013 = vmatmul.mubr.f32.vlgmr.msra.gmra.mrb[12].mxu0 %v895_v60  ;;  %2403 = vmatprep.mubr.f32.mxu1 %v895_v60  ;;  %v897_v39 = vsel %vm889_vm6, %v885_v53, %v893_v59  ;;  %v898_v49 = vsel %vm890_vm7, %v886_v54, %v894_v61 }
 0x40a   :  { %2404 = vmatmul.mubr.f32.vlgmr.msra.gmra.mrb[16].mxu1 %v896_v43  ;;  %1018 = vmatprep.mubr.f32.mxu0 %v3036_v0 }
 0x40b   :  { %2406 = vmatprep.mubr.f32.mxu1 %v897_v39 }
 0x40d   :  { %1019 = vmatmul.mubr.f32.gmra.mrb[14].mxu0 %v896_v43 }
 0x40e   :  { %2407 = vmatmul.mubr.f32.gmra.mrb[18].mxu1 %v898_v49  ;;  %1024 = vmatprep.mubr.f32.mxu0 %v3036_v0 }
 0x40f   :  { %2417 = vmatprep.mubr.msk.f32.mxu1 %vm322_vm1, %v3194_v41 }
 0x411   :  { %1025 = vmatmul.mubr.f32.gmra.mrb[16].mxu0 %v897_v39 }
 0x412   :  { %1030 = vmatprep.mubr.f32.mxu0 %v3036_v0 }
 0x415   :  { %1031 = vmatmul.mubr.f32.gmra.mrb[18].mxu0 %v898_v49 }
 0x416   :  { %2431 = vmatprep.mubr.msk.f32.mxu0 %vm322_vm1, %v3201_v42 }
 0x4dc   :  { %v1014_v50 = vpop.f32.mrb[12].mxu0 }
 0x4dd   :  { %v3419_v62 = vpop.f32.mrb[13].mxu0  ;;  %v2405_v5 = vpop.f32.mrb[16].mxu1 }
 0x4de   :  { %v1103_v6 = vpop.f32.mrb[17].mxu1 }
 0x4df   :  { %v2777_v9 = vpack.c.bf16 %v2405_v5, %v1103_v6 }
 0x4e0   :  { %v1020_v10 = vpop.f32.mrb[14].mxu0 }
 0x4e1   :  { %v2769_v12 = vpack.c.bf16 %v1020_v10, %v1014_v50  ;;  %v3421_v13 = vpop.f32.mrb[15].mxu0  ;;  %v2408_v15 = vpop.f32.mrb[18].mxu1  ;;  %2778 = vmatprep.subr.bf16.mxu0 %v2777_v9 }
 0x4e2   :  { %v1113_v41 = vpop.f32.mrb[19].mxu1  ;;  %2780 = vmatpush3.bf16.msra.mxu0 %v2777_v9 }
 0x4e3   :  { %v2781_v16 = vpack.c.bf16 %v2408_v15, %v1113_v41  ;;  %2770 = vmatprep.subr.bf16.mxu1 %v2769_v12 }
 0x4e4   :  { %v1026_v18 = vpop.f32.mrb[16].mxu0  ;;  %2772 = vmatpush3.bf16.msra.mxu1 %v2769_v12 }
 0x4e5   :  { %v3423_v19 = vpop.f32.mrb[17].mxu0  ;;  %2782 = vmatprep.subr.bf16.mxu0 %v2781_v16 }
 0x4e6   :  { %2784 = vmatpush3.bf16.msra.mxu0 %v2781_v16 }
 0x4e7   :  { %2809 = vmatprep.subr.bf16.mxu0 %v3037_v4 }
 0x4e8   :  { %v1032_v42 = vpop.f32.mrb[18].mxu0 }
 0x4e9   :  { %v2773_v21 = vpack.c.bf16 %v1032_v42, %v1026_v18  ;;  %v1034_v24 = vpop.f32.mrb[19].mxu0  ;;  %2432 = vmatmul.mubr.msk.f32.vlgmr.msra.gmra.mrb[20].mxu0 %vm322_vm1, %v3214_v56  ;;  %v1310_v18 = vld [vmem:[%s3580_s8] sm:$0x1] }
 0x4ea   :  { %2434 = vmatprep.mubr.msk.f32.mxu0 %vm322_vm1, %v3219_v57  ;;  %2811 = vmatpush3.bf16.msra.mxu0 %v3243_v2 }
 0x4eb   :  { %2774 = vmatprep.subr.bf16.mxu1 %v2773_v21  ;;  %2812 = vmatprep.subr.bf16.mxu0 %v3037_v4 }
 0x4ec   :  { %2776 = vmatpush3.bf16.msra.mxu1 %v2773_v21 }
 0x4ed   :  { %2435 = vmatmul.mubr.msk.f32.gmra.mrb[22].mxu0 %vm322_vm1, %v3236_v63  ;;  %2785 = vmatprep.subr.bf16.mxu1 %v3037_v4  ;;  %v2043_v63 = vld [vmem:[%s3579_s7] ss:$0 sm:$0xff] }
 0x4ee   :  { %2814 = vmatpush3.bf16.msra.mxu0 %v3270_v8  ;;  %2504 = vmatprep.mubr.msk.f32.mxu0 %vm3038_vm2, %v3036_v0 }
 0x4ef   :  { %2418 = vmatmul.mubr.msk.f32.vlgmr.msra.gmra.mrb[20].mxu1 %vm322_vm1, %v3241_v1  ;;  %2815 = vmatprep.subr.bf16.mxu0 %v3037_v4 }
 0x4f0   :  { %2420 = vmatprep.mubr.msk.f32.mxu1 %vm322_vm1, %v3248_v3  ;;  %2787 = vmatpush3.bf16.msra.mxu1 %v3243_v2  ;;  %v1129_v2 = vadd.f32 %v2043_v63, %v3421_v13 }
 0x4f1   :  { %2788 = vmatprep.subr.bf16.mxu1 %v3037_v4 }
 0x4f2   :  { %2817 = vmatpush3.bf16.msra.mxu0 %v3283_v11 }
 0x4f3   :  { %2421 = vmatmul.mubr.msk.f32.gmra.mrb[22].mxu1 %vm322_vm1, %v3267_v7  ;;  %2818 = vmatprep.subr.bf16.mxu0 %v3037_v4  ;;  %v1128_v7 = vadd.f32 %v2043_v63, %v3419_v62 }
 0x4f4   :  { %2790 = vmatpush3.bf16.msra.mxu1 %v3270_v8  ;;  %2469 = vmatprep.mubr.msk.f32.mxu1 %vm3038_vm2, %v3036_v0 }
 0x4f5   :  { %2791 = vmatprep.subr.bf16.mxu1 %v3037_v4 }
 0x4f6   :  { %2820 = vmatpush3.bf16.msra.mxu0 %v3293_v14 }
 0x4f7   :  { %2821 = vmatprep.subr.bf16.mxu0 %v3037_v4 }
 0x4f8   :  { %2793 = vmatpush3.bf16.msra.mxu1 %v3283_v11 }
 0x4f9   :  { %2794 = vmatprep.subr.bf16.mxu1 %v3037_v4 }
 0x4fa   :  { %2823 = vmatpush3.bf16.msra.mxu0 %v3303_v17 }
 0x4fb   :  { %2824 = vmatprep.subr.bf16.mxu0 %v3037_v4 }
 0x4fc   :  { %2796 = vmatpush3.bf16.msra.mxu1 %v3293_v14 }
 0x4fd   :  { %2797 = vmatprep.subr.bf16.mxu1 %v3037_v4 }
 0x4fe   :  { %2826 = vmatpush3.bf16.msra.mxu0 %v3313_v20 }
 0x4ff   :  { %2827 = vmatprep.subr.bf16.mxu0 %v3037_v4 }
 0x500   :  { %2799 = vmatpush3.bf16.msra.mxu1 %v3303_v17 }
 0x501   :  { %2800 = vmatprep.subr.bf16.mxu1 %v3037_v4 }
 0x502   :  { %2829 = vmatpush3.bf16.msra.mxu0 %v3323_v23 }
 0x503   :  { %2830 = vmatprep.subr.bf16.mxu0 %v3037_v4 }
 0x504   :  { %2802 = vmatpush3.bf16.msra.mxu1 %v3313_v20  ;;  %v1131_v20 = vadd.f32 %v2043_v63, %v1034_v24 }
 0x505   :  { %2803 = vmatprep.subr.bf16.mxu1 %v3037_v4 }
 0x506   :  { %2832 = vmatpush3.bf16.msra.mxu0 %v3333_v26 }
 0x507   :  { %2833 = vmatprep.subr.bf16.mxu0 %v3037_v4 }
 0x508   :  { %2805 = vmatpush3.bf16.msra.mxu1 %v3323_v23 }
 0x509   :  { %2806 = vmatprep.subr.bf16.mxu1 %v3037_v4 }
 0x50c   :  { %2808 = vmatpush3.bf16.msra.mxu1 %v3333_v26  ;;  %v1130_v26 = vadd.f32 %v2043_v63, %v3423_v19 }
 0x50d   :  { %2507 = vmatprep.subr.mxu1 %v3036_v0 }
 0x5bc   :  { %v2433_v56 = vpop.f32.mrb[20].mxu0 }
 0x5bd   :  { %v1287_v57 = vpop.f32.mrb[21].mxu0 }
 0x5c0   :  { %v2436_v1 = vpop.f32.mrb[22].mxu0 }
 0x5c1   :  { %v1297_v3 = vpop.f32.mrb[23].mxu0 }
 0x5c2   :  { %v2419_v8 = vpop.f32.mrb[20].mxu1 }
 0x5c3   :  { %v1218_v11 = vadd.f32 %v2419_v8, %v1129_v2  ;;  %v1198_v14 = vpop.f32.mrb[21].mxu1 }
 0x5c4   :  { %v1217_v17 = vadd.f32 %v1198_v14, %v1128_v7 }
 0x5c5   :  { %v3480_v23 = vadd.f32 %v2433_v56, %v1218_v11  ;;  %v1311_v56 = vld [vmem:[%s3581_s9] sm:$0x1] }
 0x5c6   :  { %v3483_v25 = vadd.f32 %v1287_v57, %v1217_v17  ;;  %v2422_v27 = vpop.f32.mrb[22].mxu1 }
 0x5c7   :  { %v1220_v28 = vadd.f32 %v2422_v27, %v1131_v20  ;;  %v1208_v29 = vpop.f32.mrb[23].mxu1  ;;  %v1392_v30 = vmul.f32 %v3480_v23, %v3480_v23 }
 0x5c8   :  { %v1391_v32 = vmul.f32 %v3483_v25, %v3483_v25  ;;  %v1219_v33 = vadd.f32 %v1208_v29, %v1130_v26  ;;  %v1312_v35 = vadd.f32 %v3480_v23, %v3483_v25 }
 0x5c9   :  { %v1309_v34 = vadd.f32 %v2436_v1, %v1220_v28 }
 0x5ca   :  { %v1308_v36 = vadd.f32 %v1297_v3, %v1219_v33  ;;  %v1395_v37 = vadd.f32 %v1392_v30, %v1391_v32 }
 0x5cb   :  { %v1394_v44 = vmul.f32 %v1309_v34, %v1309_v34 }
 0x5cc   :  { %v1313_v38 = vadd.f32 %v1312_v35, %v1308_v36  ;;  %v1393_v40 = vmul.f32 %v1308_v36, %v1308_v36  ;;  %v1831_v35 = vld [vmem:[#allocation7 + $0x80] sm:$0xff] }
 0x5ce   :  { %v1314_v46 = vadd.f32 %v1313_v38, %v1309_v34  ;;  %v1396_v47 = vadd.f32 %v1395_v37, %v1393_v40  ;;  %v2055_v37 = vld [vmem:[%s3584_s12 + $0x8] sm:$0xff]  ;;  %v1665_v38 = vld [vmem:[%s3584_s12] sm:$0xff]  ;;  %s3039_s12 = smov [#allocation9]  }
 0x5cf   :  { %s2003_s26 = sshll.u32 %s3039_s12, 4  ;;  %s2004_s26 = int_to_ptr.vmem [resolvable:$true] %s2003_s26 }
 0x5d0   :  { %v1315_v48 = vrot.slane %v1314_v46, 4  ;;  %v1397_v45 = vadd.f32 %v1396_v47, %v1394_v44  ;;  %v1833_v44 = vld [vmem:[#allocation7 + $0x90] sm:$0xff]  ;;  %s2977_s27 = scalar_lea.vmem %s2004_s26, 512  ;;  %p2982_p11 = scmp.lt.s32.totalorder %s2004_s26, %s2004_s26 }
 0x5d1   :  { %p2978_p10 = scmp.ne.s32.totalorder %s2004_s26, %s2977_s27  ;;  %p2983_p12 = scmp.lt.s32.totalorder %s2977_s27, %s2977_s27 }
 0x5d2   :  { %v1316_v51 = vadd.f32 %v1315_v48, %v1314_v46  ;;  %v1398_v52 = vrot.slane %v1397_v45, 4  ;;  %v1834_v46 = vld [vmem:[#allocation7 + $0x98] sm:$0xff]  ;;  %v1835_v48 = vld [vmem:[#allocation7 + $0xa0] sm:$0xff] }
 0x5d3   :  { %v2849_v47 = vpack.c.bf16 %v1834_v46, %v1833_v44  ;;  %p2984_p13 = por %p2983_p12, %p2982_p11 }
 0x5d4   :  { %v1317_v53 = vrot.slane %v1316_v51, 2  ;;  %v1399_v54 = vadd.f32 %v1398_v52, %v1397_v45  ;;  %v1836_v45 = vld [vmem:[#allocation7 + $0xa8] sm:$0xff]  ;;  %v1837_v52 = vld [vmem:[#allocation7 + $0xb0] sm:$0xff] }
 0x5d5   :  { %p2985_p0 = pnand %p2984_p13, %p2978_p10 }
 0x5d6   :  { %v1318_v55 = vadd.f32 %v1317_v53, %v1316_v51  ;;  %v1400_v58 = vrot.slane %v1399_v54, 2  ;;  %v2852_v51 = vpack.c.bf16 %v1836_v45, %v1835_v48  ;;  %v1838_v53 = vld [vmem:[#allocation7 + $0xb8] sm:$0xff] }
 0x5d8   :  { %v1319_v59 = vrot.slane %v1318_v55, 1  ;;  %v1401_v60 = vadd.f32 %v1400_v58, %v1399_v54  ;;  %v2855_v54 = vpack.c.bf16 %v1838_v53, %v1837_v52  ;;  %v1840_v58 = vld [vmem:[#allocation7 + $0xc8] sm:$0xff] }
 0x5da   :  { %v1320_v43 = vadd.f32 %v1319_v59, %v1318_v55  ;;  %v1402_v61 = vrot.slane %v1401_v60, 1  ;;  %v1839_v55 = vld [vmem:[#allocation7 + $0xc0] sm:$0xff] }
 0x5db   :  { %v2858_v59 = vpack.c.bf16 %v1840_v58, %v1839_v55 }
 0x5dc   :  { %2470 = vmatmul.mubr.f32.vlgmr.msra.gmra.mrb[24].mxu1 %v1320_v43  ;;  %v1403_v39 = vadd.f32 %v1402_v61, %v1401_v60  ;;  %v1841_v60 = vld [vmem:[#allocation7 + $0xd0] sm:$0xff]  ;;  %v1842_v43 = vld [vmem:[#allocation7 + $0xd8] sm:$0xff] }
 0x5dd   :  { %2508 = vmatpush3.msra.mxu1 %v3389_v22  ;;  %2509 = vmatprep.mubr.msk.f32.mxu1 %vm3038_vm2, %v3036_v0  ;;  %v2861_v61 = vpack.c.bf16 %v1842_v43, %v1841_v60 }
 0x5de   :  { %2505 = vmatmul.mubr.f32.vlgmr.msra.gmra.mrb[24].mxu0 %v1403_v39  ;;  %2512 = vmatprep.subr.mxu1 %v3036_v0  ;;  %v1843_v39 = vld [vmem:[#allocation7 + $0xe0] sm:$0xff] }
 0x5df   :  { %2525 = vmatprep.mubr.msk.f32.mxu0 %vm3038_vm2, %v3036_v0 }
 0x6af   :  { %v1387_v49 = vpop.f32.mrb[24].mxu1 }
 0x6b0   :  { %v1474_v50 = vmul.f32 0.001953125, %v1387_v49  ;;  %v2471_v62 = vpop.f32.mrb[25].mxu1  ;;  %v1844_v49 = vld [vmem:[#allocation7 + $0xe8] sm:$0xff] }
 0x6b1   :  { %v1470_v5 = vpop.f32.mrb[24].mxu0  ;;  %v1845_v62 = vld [vmem:[#allocation7 + $0xf0] sm:$0xff] }
 0x6b2   :  { %v1476_v6 = vmul.f32 %v1474_v50, %v1474_v50  ;;  %v1475_v9 = vmul.f32 0.001953125, %v1470_v5  ;;  %v2506_v10 = vpop.f32.mrb[25].mxu0  ;;  %v1846_v5 = vld [vmem:[#allocation7 + $0xf8] sm:$0xff] }
 0x6b3   :  { %v1740_v10 = vld [vmem:[#allocation7 + $0x8] sm:$0xff] }
 0x6b4   :  { %v1477_v12 = vsub.f32 %v1475_v9, %v1476_v6  ;;  %v2867_v6 = vpack.c.bf16 %v1846_v5, %v1845_v62  ;;  %v1739_v9 = vld [vmem:[#allocation7] sm:$0xff] }
 0x6b6   :  { %v1478_v13 = vmax.f32 %v1477_v12, 0.0  ;;  %v2870_v12 = vpack.c.bf16 %v1740_v10, %v1739_v9 }
 0x6b8   :  { %v1479_v15 = vadd.f32 1e-05, %v1478_v13  ;;  %v1741_v13 = vld [vmem:[#allocation7 + $0x10] sm:$0xff] }
 0x6ba   :  { %2909 = vrsqrt.f32 %v1479_v15  ;;  %v1742_v15 = vld [vmem:[#allocation7 + $0x18] sm:$0xff] }
 0x6c4   :  { %v2910_v41 = vpop.eup %2909 }
 0x6c5   :  { %2510 = vmatmul.mubr.msk.f32.vlgmr.msra.gmra.mrb[26].mxu1 %vm718_vm3, %v2910_v41  ;;  %v1555_v16 = vmul.f32 %v2910_v41, %v1474_v50  ;;  %v2864_v50 = vpack.c.bf16 %v1844_v49, %v1843_v39 }
 0x6c6   :  { %2513 = vmatpush3.msra.mxu1 %v3389_v22  ;;  %2514 = vmatprep.mubr.msk.f32.mxu1 %vm3038_vm2, %v3036_v0 }
 0x6c7   :  { %2839 = vmatprep.subr.bf16.mxu1 %v3037_v4 }
 0x6c9   :  { %2515 = vmatmul.mubr.msk.f32.vlgmr.msra.gmra.mrb[28].mxu1 %vm718_vm3, %v1555_v16 }
 0x6ca   :  { %2536 = vmatprep.mubr.msk.f32.mxu1 %vm3038_vm2, %v3036_v0 }
 0x798   :  { %v1550_v19 = vpop.f32.mrb[26].mxu1 }
 0x799   :  { %v1554_v42 = vmul.f32 %v1550_v19, %v1310_v18  ;;  %v2511_v21 = vpop.f32.mrb[27].mxu1 }
 0x79a   :  { %v1743_v21 = vld [vmem:[#allocation7 + $0x20] sm:$0xff] }
 0x79b   :  { %v1634_v22 = vrot.slane %v1554_v42, %v3401_v31  ;;  %v2873_v42 = vpack.c.bf16 %v1742_v15, %v1741_v13 }
 0x79c   :  { %v1625_v24 = vpop.f32.mrb[28].mxu1 }
 0x79d   :  { %v2516_v57 = vpop.f32.mrb[29].mxu1  ;;  %v1629_v63 = vmul.f32 %v1625_v24, %v1310_v18  ;;  %v1635_v2 = vmul.f32 %v1634_v22, %v3483_v25  ;;  %v1636_v3 = vmul.f32 %v1634_v22, %v3480_v23  ;;  %v1637_v7 = vmul.f32 %v1634_v22, %v1308_v36  ;;  %v1832_v36 = vld [vmem:[#allocation7 + $0x88] sm:$0xff] }
 0x79e   :  { %v1638_v8 = vmul.f32 %v1634_v22, %v1309_v34  ;;  %v2846_v40 = vpack.c.bf16 %v1832_v36, %v1831_v35  ;;  %v1744_v24 = vld [vmem:[#allocation7 + $0x28] sm:$0xff]  ;;  %v1746_v57 = vld [vmem:[#allocation7 + $0x38] sm:$0xff] }
 0x79f   :  { %v1630_v1 = vsub.f32 %v1311_v56, %v1629_v63  ;;  %v2876_v22 = vpack.c.bf16 %v1744_v24, %v1743_v21  ;;  %v1745_v56 = vld [vmem:[#allocation7 + $0x30] sm:$0xff] }
 0x7a0   :  { %v2879_v63 = vpack.c.bf16 %v1746_v57, %v1745_v56 }
 0x7a1   :  { %v1643_v11 = vrot.slane %v1630_v1, %v3401_v31  ;;  %v1747_v1 = vld [vmem:[#allocation7 + $0x40] sm:$0xff] }
 0x7a3   :  { %v1645_v14 = vadd.f32 %v1643_v11, %v1635_v2  ;;  %v1646_v17 = vadd.f32 %v1643_v11, %v1636_v3  ;;  %v1647_v20 = vadd.f32 %v1643_v11, %v1637_v7  ;;  %v1648_v26 = vadd.f32 %v1643_v11, %v1638_v8  ;;  %v1748_v2 = vld [vmem:[#allocation7 + $0x48] sm:$0xff]  ;;  %v1750_v7 = vld [vmem:[#allocation7 + $0x58] sm:$0xff]  ;;  %v1751_v11 = vld [vmem:[#allocation7 + $0x60] sm:$0xff] }
 0x7a4   :  { %v2882_v3 = vpack.c.bf16 %v1748_v2, %v1747_v1 }
 0x7a5   :  { %vm1649_vm8 = vcmp.gt.f32.partialorder %v1645_v14, 0.0  ;;  %vm1650_vm9 = vcmp.gt.f32.partialorder %v1646_v17, 0.0  ;;  %v1653_v27 = vmul.f32 0.2, %v1645_v14  ;;  %v1654_v28 = vmul.f32 0.2, %v1646_v17 }
 0x7a6   :  { %vm1651_vm10 = vcmp.gt.f32.partialorder %v1647_v20, 0.0  ;;  %vm1652_vm11 = vcmp.gt.f32.partialorder %v1648_v26, 0.0  ;;  %v1655_v29 = vmul.f32 0.2, %v1647_v20  ;;  %v1656_v30 = vmul.f32 0.2, %v1648_v26 }
 0x7a7   :  { %v1657_v32 = vsel %vm1649_vm8, %v1645_v14, %v1653_v27  ;;  %v1658_v25 = vsel %vm1650_vm9, %v1646_v17, %v1654_v28  ;;  %v1752_v14 = vld [vmem:[#allocation7 + $0x68] sm:$0xff] }
 0x7a8   :  { %v2834_v33 = vpack.c.bf16 %v1658_v25, %v1657_v32  ;;  %1661 = vst [vmem:[#allocation9] sm:$0xff] %v1657_v32  ;;  %1662 = vst [vmem:[#allocation9 + $0x8] sm:$0xff] %v1658_v25  ;;  %v1659_v23 = vsel %vm1651_vm10, %v1647_v20, %v1655_v29  ;;  %v1660_v34 = vsel %vm1652_vm11, %v1648_v26, %v1656_v30  ;;  %v1753_v20 = vld [vmem:[#allocation7 + $0x70] sm:$0xff]  ;;  %v1754_v26 = vld [vmem:[#allocation7 + $0x78] sm:$0xff] }
 0x7a9   :  { %v2837_v31 = vpack.c.bf16 %v1660_v34, %v1659_v23  ;;  %1663 = vst [vmem:[#allocation9 + $0x10] sm:$0xff] %v1659_v23  ;;  %1664 = vst [vmem:[#allocation9 + $0x18] sm:$0xff] %v1660_v34  ;;  %v2888_v17 = vpack.c.bf16 %v1752_v14, %v1751_v11  ;;  %v2891_v27 = vpack.c.bf16 %v1754_v26, %v1753_v20 }
 0x7aa   :  { %2835 = vmatpush3.bf16.msra.mxu0 %v2834_v33  ;;  %2841 = vmatpush3.bf16.msra.mxu1 %v2834_v33 }
 0x7ab   :  { %2836 = vmatprep.subr.bf16.mxu0 %v3037_v4  ;;  %2842 = vmatprep.subr.bf16.mxu1 %v3037_v4 }
 0x7ae   :  { %2838 = vmatpush3.bf16.msra.mxu0 %v2837_v31  ;;  %2844 = vmatpush3.bf16.msra.mxu1 %v2837_v31 }
 0x7af   :  { %2845 = vmatprep.subr.bf16.mxu0 %v3037_v4 }
 0x7b1   :  { %2537 = vmatmul.mubr.msk.f32.vlgmr.msra.gmra.mrb[30].mxu1 %vm322_vm1, %v2055_v37  ;;  %2526 = vmatmul.mubr.msk.f32.vlgmr.msra.gmra.mrb[26].mxu0 %vm322_vm1, %v1665_v38 }
 0x7b2   :  { %2847 = vmatpush3.bf16.msra.mxu0 %v2846_v40  ;;  %2571 = vmatprep.mubr.msk.f32.mxu0 %vm3038_vm2, %v3036_v0 }
 0x7b3   :  { %2848 = vmatprep.subr.bf16.mxu0 %v3037_v4 }
 0x7b6   :  { %2850 = vmatpush3.bf16.msra.mxu0 %v2849_v47 }
 0x7b7   :  { %2851 = vmatprep.subr.bf16.mxu0 %v3037_v4 }
 0x7ba   :  { %2853 = vmatpush3.bf16.msra.mxu0 %v2852_v51 }
 0x7bb   :  { %2854 = vmatprep.subr.bf16.mxu0 %v3037_v4 }
 0x7be   :  { %2856 = vmatpush3.bf16.msra.mxu0 %v2855_v54 }
 0x7bf   :  { %2857 = vmatprep.subr.bf16.mxu0 %v3037_v4 }
 0x7c2   :  { %2859 = vmatpush3.bf16.msra.mxu0 %v2858_v59 }
 0x7c3   :  { %2860 = vmatprep.subr.bf16.mxu0 %v3037_v4 }
 0x7c6   :  { %2862 = vmatpush3.bf16.msra.mxu0 %v2861_v61 }
 0x7c7   :  { %2863 = vmatprep.subr.bf16.mxu0 %v3037_v4 }
 0x7ca   :  { %2865 = vmatpush3.bf16.msra.mxu0 %v2864_v50 }
 0x7cb   :  { %2866 = vmatprep.subr.bf16.mxu0 %v3037_v4 }
 0x7ce   :  { %2868 = vmatpush3.bf16.msra.mxu0 %v2867_v6 }
 0x7cf   :  { %2869 = vmatprep.subr.bf16.mxu0 %v3037_v4 }
 0x884   :  { %v1826_v41 = vpop.f32.mrb[30].mxu1  ;;  %v1735_v16 = vpop.f32.mrb[26].mxu0 }
 0x885   :  { %v2538_v18 = vpop.f32.mrb[31].mxu1  ;;  %2572 = vmatmul.mubr.f32.vlgmr.msra.gmra.mrb[28].mxu0 %v1826_v41  ;;  %v2527_v19 = vpop.f32.mrb[27].mxu0 }
 0x886   :  { %2871 = vmatpush3.bf16.msra.mxu0 %v2870_v12  ;;  %2606 = vmatprep.mubr.msk.f32.mxu0 %vm3038_vm2, %v3036_v0  ;;  %v1749_v0 = vld [vmem:[#allocation7 + $0x50] sm:$0xff] }
 0x887   :  { %2872 = vmatprep.subr.bf16.mxu0 %v3037_v4  ;;  %v2885_v8 = vpack.c.bf16 %v1750_v7, %v1749_v0 }
 0x88a   :  { %2874 = vmatpush3.bf16.msra.mxu0 %v2873_v42 }
 0x88b   :  { %2875 = vmatprep.subr.bf16.mxu0 %v3037_v4 }
 0x88e   :  { %2877 = vmatpush3.bf16.msra.mxu0 %v2876_v22 }
 0x88f   :  { %2878 = vmatprep.subr.bf16.mxu0 %v3037_v4 }
 0x892   :  { %2880 = vmatpush3.bf16.msra.mxu0 %v2879_v63 }
 0x893   :  { %2881 = vmatprep.subr.bf16.mxu0 %v3037_v4 }
 0x896   :  { %2883 = vmatpush3.bf16.msra.mxu0 %v2882_v3 }
 0x897   :  { %2884 = vmatprep.subr.bf16.mxu0 %v3037_v4 }
 0x89a   :  { %2886 = vmatpush3.bf16.msra.mxu0 %v2885_v8 }
 0x89b   :  { %2887 = vmatprep.subr.bf16.mxu0 %v3037_v4 }
 0x89e   :  { %2889 = vmatpush3.bf16.msra.mxu0 %v2888_v17 }
 0x89f   :  { %2890 = vmatprep.subr.bf16.mxu0 %v3037_v4 }
 0x8a2   :  { %2892 = vmatpush3.bf16.msra.mxu0 %v2891_v27 }
 0x8a5   :  { %2607 = vmatmul.mubr.f32.vlgmr.msra.gmra.mrb[28].mxu0 %v1735_v16 }
 0x8a6   :  { %2988 = shalt.err (!%p2985_p0)
}
 0x8a7   :  { %s2989_s13 = scalar_lea.hbm %s3587_s15, 512 }
 0x8a8   :  { %p2990_p1 = scmp.ne.s32.totalorder %s3587_s15, %s2989_s13  ;;  %p2993_p2 = scmp.lt.u32.totalorder %s2989_s13, %s3587_s15 }
 0x8aa   :  { %p2995_p3 = pnand %p2993_p2, %p2990_p1 }
 0x8ac   :  { %2998 = shalt.err (!%p2995_p3)
}
 0x8ad   :  { %2009 = dma.vmem_to_hbm [thread:$0]  %s2004_s26, 512, %s3587_s15, [#allocation10], %s3034_s1, %s3034_s1, %s3035_s21  }
 0x8ae   :  { %s3040_s10 = smov [#allocation8]  }
 0x8af   :  { %s1994_s11 = sshll.u32 %s3040_s10, 4  ;;  %s1995_s11 = int_to_ptr.vmem [resolvable:$true] %s1994_s11 }
 0x8b0   :  { %s2999_s17 = scalar_lea.vmem %s1995_s11, 128  ;;  %p3004_p5 = scmp.lt.s32.totalorder %s1995_s11, %s1995_s11 }
 0x8b1   :  { %p3000_p4 = scmp.ne.s32.totalorder %s1995_s11, %s2999_s17  ;;  %p3005_p6 = scmp.lt.s32.totalorder %s2999_s17, %s2999_s17 }
 0x8b3   :  { %p3006_p7 = por %p3005_p6, %p3004_p5 }
 0x8b5   :  { %p3007_p8 = pnand %p3006_p7, %p3000_p4 }
 0x978   :  { %v1983_v4 = vpop.f32.mrb[28].mxu0 }
 0x979   :  { %1987 = vst [vmem:[#allocation8] sm:$0xff] %v1983_v4  ;;  %v2608_v28 = vpop.f32.mrb[29].mxu0 }
 0x97a   :  { %3010 = shalt.err (!%p3007_p8)
}
 0x97b   :  { %s3011_s5 = scalar_lea.hbm %s3586_s14, 128 }
 0x97c   :  { %p3012_p9 = scmp.ne.s32.totalorder %s3586_s14, %s3011_s5  ;;  %p3015_p10 = scmp.lt.u32.totalorder %s3011_s5, %s3586_s14 }
 0x97e   :  { %p3017_p11 = pnand %p3015_p10, %p3012_p9 }
 0x980   :  { %3020 = shalt.err (!%p3017_p11)
}
 0x981   :  { %1997 = dma.vmem_to_hbm [thread:$0]  %s1995_s11, 128, %s3586_s14, [#allocation4]  }
 0x982   :  { %3025 = dma.done.wait [#allocation4], 128  }
 0x983   :  { %3026 = vsyncadd [#allocation4], 4294967168 }
 0x984   :  { %3027 = dma.done.wait [#allocation10], 512  }
 0x985   :  { %3028 = vsyncadd [#allocation10], 4294966784 }
 0x986   :  { %2016 = vsyncpa [#allocation3], 1 }
 0x987   :  { %2017 = vsyncpa [#allocation6], 1 }
 0x988   :  { %2018 = vsyncpa [#allocation4], 1 }
 0x989   :  { %2019 = vsyncpa [#allocation10], 1 }

</bundles_post_ra>
